<compile_context>
chip_gen: v7x
topology: tpu7x:2x2x1
jax: 0.10.0
libtpu: 0.0.40
codegen_flags: <defaults>
</compile_context>

<pallas_src>
import functools
import warnings

import jax
import jax.numpy as jnp
from jax.experimental import pallas as pl
from jax.experimental.pallas import tpu as pltpu


def _round_up(x, m):
    return ((x + m - 1) // m) * m


def _vmem_capacity_bytes():
    """Physical VMEM per TensorCore; used to derive an honest scoped limit."""
    try:
        info = pltpu.get_tpu_info()
        cap = int(getattr(info, "vmem_capacity_bytes", 0) or 0)
        if cap > 0:
            return cap
    except Exception:
        pass
    try:
        kind = jax.devices()[0].device_kind.lower()
    except Exception:
        kind = ""
    if "v7" in kind:
        return 64 << 20
    if "v5" in kind or "v6" in kind:
        return 128 << 20
    return 64 << 20  # conservative default for unknown chips


# ----------------------------------------------------------------------------
# Kernel: full 3-layer MLP hot path.
#   layer 0: VPU broadcast-MACs (real K is tiny; MXU would idle),
#   layers 1/2: bf16 MXU matmuls with f32 accumulation,
#   bias + ReLU + bf16 cast fused so f32 intermediates die immediately.
# ----------------------------------------------------------------------------
def _score_model_kernel(x_ref, w0_ref, b0_ref, w1_ref, b1_ref, w2_ref, b2_ref,
                        o_ref, *, fin):
    f32, bf16 = jnp.float32, jnp.bfloat16
    tb = x_ref.shape[0]
    hp = w0_ref.shape[1]

    # ---- Layer 0 on the VPU (K = real Fin, e.g. 3) --------------------------
    x = x_ref[...]                                   # (TB, Fin_p) f32
    w0 = w0_ref[...]                                 # (Fin_p, H_p) f32
    h = jnp.broadcast_to(b0_ref[...], (tb, hp))      # start from the bias
    for k in range(fin):                             # fin is a static int
        h = h + x[:, k:k + 1] * w0[k:k + 1, :]
    h = jnp.maximum(h, 0.0).astype(bf16)             # fused relu + bf16 cast

    # ---- Layer 1: dominant (TB, H_p) @ (H_p, H_p) bf16 matmul, f32 acc ------
    h = jnp.dot(h, w1_ref[...], preferred_element_type=f32)
    h = jnp.maximum(h + b1_ref[...], 0.0).astype(bf16)   # fused bias+relu+cast

    # ---- Layer 2 (no relu); lane-dense bf16 output store --------------------
    o = jnp.dot(h, w2_ref[...], preferred_element_type=f32)
    o_ref[...] = (o + b2_ref[...]).astype(o_ref.dtype)


def _const_spec(shape):
    """Whole-array parameter block (same block index every grid step).

    Returns (spec, single_buffered). Single-buffering the weights is the
    difference between ~33 MiB and ~66 MiB resident for the real model."""
    idx = lambda i: (0,) * len(shape)
    try:
        return pl.BlockSpec(shape, idx, pipeline_mode=pl.Buffered(1)), True
    except Exception:
        # Older JAX without pipeline_mode: default double buffering. The caller
        # accounts for this explicitly in the VMEM budget (no silent OOM).
        return pl.BlockSpec(shape, idx), False


# ----------------------------------------------------------------------------
# One-time parameter preparation (hoisted off the per-call forward path).
# ----------------------------------------------------------------------------
def pad_params(params):
    """Pad + cast parameters ONCE. Zero padding is mathematically inert
    (padded rows/cols and biases are zero, ReLU(0) = 0)."""
    Fin, H = params["w0"].shape
    Fout = params["w2"].shape[1]
    Fin_p = _round_up(Fin, 8)
    H_p = _round_up(H, 128)          # e.g. real 4000 -> 4096
    Fout_p = _round_up(Fout, 128)    # lane-dense output stores
    f32, bf16 = jnp.float32, jnp.bfloat16

    w0 = jnp.zeros((Fin_p, H_p), f32).at[:Fin, :H].set(params["w0"].astype(f32))
    b0 = jnp.zeros((1, H_p), f32).at[:, :H].set(params["b0"].astype(f32))
    w1 = jnp.zeros((H_p, H_p), bf16).at[:H, :H].set(params["w1"].astype(bf16))
    b1 = jnp.zeros((1, H_p), f32).at[:, :H].set(params["b1"].astype(f32))
    w2 = jnp.zeros((H_p, Fout_p), bf16).at[:H, :Fout].set(params["w2"].astype(bf16))
    b2 = jnp.zeros((1, Fout_p), f32).at[:, :Fout].set(params["b2"].astype(f32))

    meta = dict(Fin=Fin, H=H, Fout=Fout, Fin_p=Fin_p, H_p=H_p, Fout_p=Fout_p)
    return (w0, b0, w1, b1, w2, b2), meta


# ----------------------------------------------------------------------------
# Forward: pad x per call, run the kernel, slice the padding back off.
# ----------------------------------------------------------------------------
def _score_model_forward(x, w0, b0, w1, b1, w2, b2, *, meta, tile_b, vmem_cap):
    Fin, Fout = meta["Fin"], meta["Fout"]
    Fin_p, H_p, Fout_p = meta["Fin_p"], meta["H_p"], meta["Fout_p"]
    N = x.shape[0]
    N_p = _round_up(max(N, 1), tile_b)

    # Only x is (re)padded per call: N x Fin_p f32, negligible HBM traffic.
    x_p = jnp.zeros((N_p, Fin_p), jnp.float32).at[:N, :Fin].set(
        x.astype(jnp.float32))

    grid = (N_p // tile_b,)

    shapes = [(Fin_p, H_p), (1, H_p), (H_p, H_p), (1, H_p),
              (H_p, Fout_p), (1, Fout_p)]
    spec_pairs = [_const_spec(s) for s in shapes]
    const_specs = [s for s, _ in spec_pairs]
    single_buffered = all(sb for _, sb in spec_pairs)

    # --- honest VMEM budget, clamped by the chip's physical capacity ---------
    weight_bytes = 4 * Fin_p * H_p + 2 * H_p * H_p + 2 * H_p * Fout_p
    if not single_buffered:
        warnings.warn("pl.Buffered(1) unavailable: weights will be "
                      "double-buffered; VMEM budget adjusted accordingly.")
        weight_bytes *= 2
    bias_bytes = 4 * (2 * H_p + Fout_p)
    io_bytes = 2 * (tile_b * Fin_p * 4) + 2 * (tile_b * Fout_p * 2)
    interm_bytes = 3 * tile_b * H_p * 4   # f32 dot result + bf16 copies + slack
    vmem_needed = weight_bytes + bias_bytes + io_bytes + interm_bytes + (4 << 20)

    headroom = 4 << 20
    if vmem_needed > vmem_cap - headroom:
        raise ValueError(
            f"ScoreModel Pallas kernel needs ~{vmem_needed >> 20} MiB VMEM but "
            f"this chip provides {vmem_cap >> 20} MiB/TensorCore; reduce "
            f"tile_b (currently {tile_b}) or chunk layers 1/2 over H.")
    vmem_limit = int(min(max(vmem_needed, 16 << 20), vmem_cap - headroom))

    flops = 2 * N_p * (Fin_p * H_p + H_p * H_p + H_p * Fout_p)
    bytes_accessed = (weight_bytes + bias_bytes
                      + N_p * Fin_p * 4 + N_p * Fout_p * 2)
    cost = pl.CostEstimate(flops=flops, transcendentals=0,
                           bytes_accessed=int(bytes_accessed))

    kernel = functools.partial(_score_model_kernel, fin=Fin)
    out_p = pl.pallas_call(
        kernel,
        out_shape=jax.ShapeDtypeStruct((N_p, Fout_p), jnp.bfloat16),
        grid_spec=pltpu.PrefetchScalarGridSpec(
            num_scalar_prefetch=0,
            grid=grid,
            in_specs=[pl.BlockSpec((tile_b, Fin_p), lambda i: (i, 0))]  # x tile
                     + const_specs,                                     # params
            out_specs=pl.BlockSpec((tile_b, Fout_p), lambda i: (i, 0)),
        ),
        compiler_params=pltpu.CompilerParams(
            # Batch axis is independent -> eligible for megacore sharding.
            # TODO(synk): verify in xprof that both v7x TensorCores engage with
            # "parallel"; if not, switch this axis to pltpu.CORE_PARALLEL.
            dimension_semantics=("parallel",),
            vmem_limit_bytes=vmem_limit,
        ),
        cost_estimate=cost,
    )(x_p, w0, b0, w1, b1, w2, b2)

    return out_p[:N, :Fout].astype(jnp.float32)


def make_score_model(params, *, tile_b=None):
    """Prepare (pad/cast) parameters once and return a jitted forward(x).

    tile_b default: 512 on 128-MiB-VMEM chips (v5e/v6e), 256 on 64-MiB chips
    (v7x) so the weight-resident plan plus f32 intermediates always fit.
    """
    padded, meta = pad_params(params)          # done ONCE, not per call
    vmem_cap = _vmem_capacity_bytes()
    if tile_b is None:
        tile_b = 512 if vmem_cap >= (100 << 20) else 256

    fwd = jax.jit(functools.partial(_score_model_forward, meta=meta,
                                    tile_b=tile_b, vmem_cap=vmem_cap))
    return lambda x: fwd(x, *padded)


# ----------------------------------------------------------------------------
# Deterministic parameter init (PyTorch nn.Linear-style uniform bounds).
# ----------------------------------------------------------------------------
def init_params(key, layer_sizes):
    params = {}
    keys = jax.random.split(key, 2 * (len(layer_sizes) - 1))
    for i in range(len(layer_sizes) - 1):
        fan_in, fan_out = layer_sizes[i], layer_sizes[i + 1]
        bound = 1.0 / (fan_in ** 0.5)
        params[f"w{i}"] = jax.random.uniform(
            keys[2 * i], (fan_in, fan_out), minval=-bound, maxval=bound,
            dtype=jnp.float32)
        params[f"b{i}"] = jax.random.uniform(
            keys[2 * i + 1], (1, fan_out), minval=-bound, maxval=bound,
            dtype=jnp.float32)
    return params


def reference_forward(x, params):
    """Mirror of the kernel math: f32 layer 0, bf16 matmuls w/ f32 acc."""
    f32, bf = jnp.float32, jnp.bfloat16
    h = jnp.dot(x.astype(f32), params["w0"].astype(f32)) + params["b0"]
    h = jnp.maximum(h, 0.0).astype(bf)
    h = jnp.dot(h, params["w1"].astype(bf),
                preferred_element_type=f32) + params["b1"]
    h = jnp.maximum(h, 0.0).astype(bf)
    o = jnp.dot(h, params["w2"].astype(bf),
                preferred_element_type=f32) + params["b2"]
    return o.astype(bf).astype(f32)


if __name__ == "__main__":
    # Small shapes consistent with the module: layers = [3, H, H, 2].
    # (original script uses [3, 4000, 4000, 2]; hidden shrunk for a quick run,
    #  batch chosen so the batch tiling exercises the grid)
    layer_sizes = [3, 256, 256, 2]
    batch = 512

    key = jax.random.PRNGKey(0)
    k_x, k_p = jax.random.split(key)
    x = jax.random.normal(k_x, (batch, layer_sizes[0]), dtype=jnp.float32)
    params = init_params(k_p, layer_sizes)

    fwd = make_score_model(params)           # params padded/cast once here
    out = jax.block_until_ready(fwd(x))

    ref = reference_forward(x, params)
    assert out.shape == (batch, layer_sizes[-1])
    assert out.dtype == jnp.float32
    assert jnp.allclose(out, ref, atol=2e-2, rtol=2e-2), "mismatch vs reference"

    print("KERNEL_OK")
</pallas_src>

<mosaic_0001>
module attributes {stable_mosaic.version = 11 : i64} {
  func.func @_score_model_kernel(%arg0: i32, %arg1: memref<256x8xf32, #tpu.memory_space<vmem>>, %arg2: memref<8x256xf32, #tpu.memory_space<vmem>>, %arg3: memref<1x256xf32, #tpu.memory_space<vmem>>, %arg4: memref<256x256xbf16, #tpu.memory_space<vmem>>, %arg5: memref<1x256xf32, #tpu.memory_space<vmem>>, %arg6: memref<256x128xbf16, #tpu.memory_space<vmem>>, %arg7: memref<1x128xf32, #tpu.memory_space<vmem>>, %arg8: memref<256x128xbf16, #tpu.memory_space<vmem>>) attributes {dimension_semantics = [#tpu.dimension_semantics<parallel>], iteration_bounds = array<i64: 2>, scalar_prefetch = 0 : i64, scratch_operands = 0 : i64, tpu.core_type = #tpu.core_type<tc>, window_params = [{transform_indices = @transform_0, window_bounds = array<i64: 256, 8>}, {pipeline_mode = #tpu.pipeline_mode<synchronous>, transform_indices = @transform_1, window_bounds = array<i64: 8, 256>}, {pipeline_mode = #tpu.pipeline_mode<synchronous>, transform_indices = @transform_2, window_bounds = array<i64: 1, 256>}, {pipeline_mode = #tpu.pipeline_mode<synchronous>, transform_indices = @transform_3, window_bounds = array<i64: 256, 256>}, {pipeline_mode = #tpu.pipeline_mode<synchronous>, transform_indices = @transform_4, window_bounds = array<i64: 1, 256>}, {pipeline_mode = #tpu.pipeline_mode<synchronous>, transform_indices = @transform_5, window_bounds = array<i64: 256, 128>}, {pipeline_mode = #tpu.pipeline_mode<synchronous>, transform_indices = @transform_6, window_bounds = array<i64: 1, 128>}, {transform_indices = @transform_7, window_bounds = array<i64: 256, 128>}]} {
    %c0 = arith.constant 0 : index
    %c0_0 = arith.constant 0 : index
    %0 = vector.load %arg1[%c0, %c0_0] : memref<256x8xf32, #tpu.memory_space<vmem>>, vector<256x8xf32>
    %c0_1 = arith.constant 0 : index
    %c0_2 = arith.constant 0 : index
    %1 = vector.load %arg2[%c0_1, %c0_2] : memref<8x256xf32, #tpu.memory_space<vmem>>, vector<8x256xf32>
    %c0_3 = arith.constant 0 : index
    %c0_4 = arith.constant 0 : index
    %2 = vector.load %arg3[%c0_3, %c0_4] : memref<1x256xf32, #tpu.memory_space<vmem>>, vector<1x256xf32>
    %3 = vector.shape_cast %2 : vector<1x256xf32> to vector<1x256xf32>
    %4 = vector.broadcast %3 : vector<1x256xf32> to vector<256x256xf32>
    %5 = vector.extract_strided_slice %0 {offsets = [0, 0], sizes = [256, 1], strides = [1, 1]} : vector<256x8xf32> to vector<256x1xf32>
    %6 = vector.extract_strided_slice %1 {offsets = [0, 0], sizes = [1, 256], strides = [1, 1]} : vector<8x256xf32> to vector<1x256xf32>
    %7 = vector.broadcast %5 : vector<256x1xf32> to vector<256x256xf32>
    %8 = vector.broadcast %6 : vector<1x256xf32> to vector<256x256xf32>
    %9 = arith.mulf %7, %8 : vector<256x256xf32>
    %10 = arith.addf %4, %9 : vector<256x256xf32>
    %11 = vector.extract_strided_slice %0 {offsets = [0, 1], sizes = [256, 1], strides = [1, 1]} : vector<256x8xf32> to vector<256x1xf32>
    %12 = vector.extract_strided_slice %1 {offsets = [1, 0], sizes = [1, 256], strides = [1, 1]} : vector<8x256xf32> to vector<1x256xf32>
    %13 = vector.broadcast %11 : vector<256x1xf32> to vector<256x256xf32>
    %14 = vector.broadcast %12 : vector<1x256xf32> to vector<256x256xf32>
    %15 = arith.mulf %13, %14 : vector<256x256xf32>
    %16 = arith.addf %10, %15 : vector<256x256xf32>
    %17 = vector.extract_strided_slice %0 {offsets = [0, 2], sizes = [256, 1], strides = [1, 1]} : vector<256x8xf32> to vector<256x1xf32>
    %18 = vector.extract_strided_slice %1 {offsets = [2, 0], sizes = [1, 256], strides = [1, 1]} : vector<8x256xf32> to vector<1x256xf32>
    %19 = vector.broadcast %17 : vector<256x1xf32> to vector<256x256xf32>
    %20 = vector.broadcast %18 : vector<1x256xf32> to vector<256x256xf32>
    %21 = arith.mulf %19, %20 : vector<256x256xf32>
    %22 = arith.addf %16, %21 : vector<256x256xf32>
    %cst = arith.constant 0.000000e+00 : f32
    %23 = vector.broadcast %cst : f32 to vector<256x256xf32>
    %24 = arith.maximumf %22, %23 : vector<256x256xf32>
    %25 = arith.truncf %24 : vector<256x256xf32> to vector<256x256xbf16>
    %c0_5 = arith.constant 0 : index
    %c0_6 = arith.constant 0 : index
    %26 = vector.load %arg4[%c0_5, %c0_6] : memref<256x256xbf16, #tpu.memory_space<vmem>>, vector<256x256xbf16>
    %cst_7 = arith.constant dense<0.000000e+00> : vector<256x256xf32>
    %27 = tpu.matmul %25, %26, %cst_7 {dimension_numbers = #tpu.dot_dimension_numbers<[1], [0], [0], [1], [0, 0, 1, 1], [], []>} : vector<256x256xbf16>, vector<256x256xbf16>, vector<256x256xf32> -> vector<256x256xf32>
    %c0_8 = arith.constant 0 : index
    %c0_9 = arith.constant 0 : index
    %28 = vector.load %arg5[%c0_8, %c0_9] : memref<1x256xf32, #tpu.memory_space<vmem>>, vector<1x256xf32>
    %29 = vector.broadcast %28 : vector<1x256xf32> to vector<256x256xf32>
    %30 = arith.addf %27, %29 : vector<256x256xf32>
    %cst_10 = arith.constant 0.000000e+00 : f32
    %31 = vector.broadcast %cst_10 : f32 to vector<256x256xf32>
    %32 = arith.maximumf %30, %31 : vector<256x256xf32>
    %33 = arith.truncf %32 : vector<256x256xf32> to vector<256x256xbf16>
    %c0_11 = arith.constant 0 : index
    %c0_12 = arith.constant 0 : index
    %34 = vector.load %arg6[%c0_11, %c0_12] : memref<256x128xbf16, #tpu.memory_space<vmem>>, vector<256x128xbf16>
    %cst_13 = arith.constant dense<0.000000e+00> : vector<256x128xf32>
    %35 = tpu.matmul %33, %34, %cst_13 {dimension_numbers = #tpu.dot_dimension_numbers<[1], [0], [0], [1], [0, 0, 1, 1], [], []>} : vector<256x256xbf16>, vector<256x128xbf16>, vector<256x128xf32> -> vector<256x128xf32>
    %c0_14 = arith.constant 0 : index
    %c0_15 = arith.constant 0 : index
    %36 = vector.load %arg7[%c0_14, %c0_15] : memref<1x128xf32, #tpu.memory_space<vmem>>, vector<1x128xf32>
    %37 = vector.broadcast %36 : vector<1x128xf32> to vector<256x128xf32>
    %38 = arith.addf %35, %37 : vector<256x128xf32>
    %39 = arith.truncf %38 : vector<256x128xf32> to vector<256x128xbf16>
    %c0_16 = arith.constant 0 : index
    %c0_17 = arith.constant 0 : index
    %40 = vector.load %arg8[%c0_16, %c0_17] : memref<256x128xbf16, #tpu.memory_space<vmem>>, vector<256x128xbf16>
    tpu.vector_store %arg8[%c0_16, %c0_17], %39 {strides = array<i32>} : memref<256x128xbf16, #tpu.memory_space<vmem>>, vector<256x128xbf16>,
    return
  }
  func.func @transform_0(%arg0: i32) -> (i32, i32) {
    %c0_i32 = arith.constant 0 : i32
    %c0_i32_0 = arith.constant 0 : i32
    return %arg0, %c0_i32 : i32, i32
  }
  func.func @transform_1(%arg0: i32) -> (i32, i32) {
    %c0_i32 = arith.constant 0 : i32
    %c0_i32_0 = arith.constant 0 : i32
    %c0_i32_1 = arith.constant 0 : i32
    return %c0_i32, %c0_i32_0 : i32, i32
  }
  func.func @transform_2(%arg0: i32) -> (i32, i32) {
    %c0_i32 = arith.constant 0 : i32
    %c0_i32_0 = arith.constant 0 : i32
    %c0_i32_1 = arith.constant 0 : i32
    return %c0_i32, %c0_i32_0 : i32, i32
  }
  func.func @transform_3(%arg0: i32) -> (i32, i32) {
    %c0_i32 = arith.constant 0 : i32
    %c0_i32_0 = arith.constant 0 : i32
    %c0_i32_1 = arith.constant 0 : i32
    return %c0_i32, %c0_i32_0 : i32, i32
  }
  func.func @transform_4(%arg0: i32) -> (i32, i32) {
    %c0_i32 = arith.constant 0 : i32
    %c0_i32_0 = arith.constant 0 : i32
    %c0_i32_1 = arith.constant 0 : i32
    return %c0_i32, %c0_i32_0 : i32, i32
  }
  func.func @transform_5(%arg0: i32) -> (i32, i32) {
    %c0_i32 = arith.constant 0 : i32
    %c0_i32_0 = arith.constant 0 : i32
    %c0_i32_1 = arith.constant 0 : i32
    return %c0_i32, %c0_i32_0 : i32, i32
  }
  func.func @transform_6(%arg0: i32) -> (i32, i32) {
    %c0_i32 = arith.constant 0 : i32
    %c0_i32_0 = arith.constant 0 : i32
    %c0_i32_1 = arith.constant 0 : i32
    return %c0_i32, %c0_i32_0 : i32, i32
  }
  func.func @transform_7(%arg0: i32) -> (i32, i32) {
    %c0_i32 = arith.constant 0 : i32
    %c0_i32_0 = arith.constant 0 : i32
    return %arg0, %c0_i32 : i32, i32
  }
}

</mosaic_0001>

<bundles_post_ra>
// kernel: _score_model_forward.1
= control target key start
LH: loop header
LB: loop body
LE: loop exit
PB: predicated region body
PF: predicated region fallthrough
CT: control target
= control target key end

     0   :  { %s2765_s24 = smov 0   ;;  %s3582_s0 = inlined_call_operand.vmem [shape: f32[512,8], index: 0, kind: input, shape index: {}]   ;;  %s3583_s1 = inlined_call_operand.vmem [shape: f32[8,256], index: 1, kind: input, shape index: {}]   ;;  %s3584_s2 = inlined_call_operand.vmem [shape: f32[1,256], index: 2, kind: input, shape index: {}]   ;;  %s3585_s3 = inlined_call_operand.vmem [shape: bf16[256,256], index: 3, kind: input, shape index: {}]   ;;  %s3586_s4 = inlined_call_operand.vmem [shape: f32[1,256], index: 4, kind: input, shape index: {}]   ;;  %s3587_s5 = inlined_call_operand.vmem [shape: bf16[256,128], index: 5, kind: input, shape index: {}]   ;;  %s3588_s6 = inlined_call_operand.vmem [shape: f32[1,128], index: 6, kind: input, shape index: {}]   ;;  %s3589_s7 = inlined_call_operand.vmem [shape: bf16[512,128], index: 7, kind: output, shape index: {}]  }
   0x1 LB: > { %s2254_s25 = sadd.s32 4294967295, %s2720_s24   ;;  %p2258_p0 = scmp.ge.s32.totalorder %s2720_s24, 1  ;;  %s2720_s24 = sphi %s2765_s24, %s17_s24  }
   0x2   : > { %p238_p1 = scmp.lt.s32.totalorder %s2720_s24, 3 }
   0x4   : > { %p239_p2 = pnand %p2258_p0, %p238_p1 }
   0x5   : > { %s2259_s26 = sshll.u32 (!%p239_p2), %s2254_s25, 5  ;;  %v2722_v0 = vmov (!%p239_p2), 2   ;;  %v2723_v1 = vmov (!%p239_p2), 1   ;;  %v2650_v2 = vld [vmem:[%s3585_s3 + $0x4] ss:$8 sps:$4 sm:$0xff] (!%p239_p2)   ;;  %v2724_v17 = vmov (!%p239_p2), 0   ;;  %v319_v63 = vlaneseq (!%p239_p2) }
   0x6   : > { %242 = sbr.rel (%p239_p2) target bundleno = 892 (0x37c), region = 48  ;;  %2597 = vset.pattern.permute.xlu0 (!%p239_p2), %v2722_v0  ;;  %2596 = vset.pattern.permute.xlu1 (!%p239_p2), %v2723_v1  ;;  %p271_p3 = scmp.lt.s32.totalorder (!%p239_p2), %s2259_s26, 63  ;;  %v2652_v3 = vld [vmem:[%s3585_s3] ss:$8 sps:$4 sm:$0xff] (!%p239_p2)   ;;  %v2653_v4 = vld [vmem:[%s3585_s3 + $0x14] ss:$8 sps:$4 sm:$0xff] (!%p239_p2)  }
   0x7   : > { %1453 = vmatprep.subr.bf16.mxu0 (!%p239_p2), %v2650_v2  ;;  %v2655_v5 = vld [vmem:[%s3585_s3 + $0x10] ss:$8 sps:$4 sm:$0xff] (!%p239_p2)   ;;  %v2656_v6 = vld [vmem:[%s3585_s3 + $0x24] ss:$8 sps:$4 sm:$0xff] (!%p239_p2)   ;;  %v2658_v10 = vld [vmem:[%s3585_s3 + $0x20] ss:$8 sps:$4 sm:$0xff] (!%p239_p2)  }
   0x8   : > { %1454 = vmatpush1.bf16.msra.mxu0 (!%p239_p2), %v2652_v3  ;;  %v2659_v11 = vld [vmem:[%s3585_s3 + $0x34] ss:$8 sps:$4 sm:$0xff] (!%p239_p2)   ;;  %v2661_v12 = vld [vmem:[%s3585_s3 + $0x30] ss:$8 sps:$4 sm:$0xff] (!%p239_p2)   ;;  %v2662_v14 = vld [vmem:[%s3585_s3 + $0x44] ss:$8 sps:$4 sm:$0xff] (!%p239_p2)  }
   0x9   : > { %1455 = vmatprep.subr.bf16.mxu0 (!%p239_p2), %v2653_v4  ;;  %v2664_v15 = vld [vmem:[%s3585_s3 + $0x40] ss:$8 sps:$4 sm:$0xff] (!%p239_p2)   ;;  %v2665_v16 = vld [vmem:[%s3585_s3 + $0x54] ss:$8 sps:$4 sm:$0xff] (!%p239_p2)   ;;  %v2667_v18 = vld [vmem:[%s3585_s3 + $0x50] ss:$8 sps:$4 sm:$0xff] (!%p239_p2)  }
   0xa   : > { %v2668_v19 = vld [vmem:[%s3585_s3 + $0x64] ss:$8 sps:$4 sm:$0xff] (!%p239_p2)   ;;  %v2670_v21 = vld [vmem:[%s3585_s3 + $0x60] ss:$8 sps:$4 sm:$0xff] (!%p239_p2)   ;;  %v2671_v22 = vld [vmem:[%s3585_s3 + $0x74] ss:$8 sps:$4 sm:$0xff] (!%p239_p2)  }
   0xb   : > { %v2673_v24 = vld [vmem:[%s3585_s3 + $0x70] ss:$8 sps:$4 sm:$0xff] (!%p239_p2)   ;;  %v2674_v25 = vld [vmem:[%s3585_s3 + $0x84] ss:$8 sps:$4 sm:$0xff] (!%p239_p2)   ;;  %v2676_v27 = vld [vmem:[%s3585_s3 + $0x80] ss:$8 sps:$4 sm:$0xff] (!%p239_p2)  }
   0xc   : > { %1456 = vmatpush1.bf16.msra.mxu0 (!%p239_p2), %v2655_v5  ;;  %v2677_v28 = vld [vmem:[%s3585_s3 + $0x94] ss:$8 sps:$4 sm:$0xff] (!%p239_p2)   ;;  %v2679_v30 = vld [vmem:[%s3585_s3 + $0x90] ss:$8 sps:$4 sm:$0xff] (!%p239_p2)   ;;  %v2680_v31 = vld [vmem:[%s3585_s3 + $0xa4] ss:$8 sps:$4 sm:$0xff] (!%p239_p2)  }
   0xd   : > { %s3591_s26 = smov (!%p271_p3, %s2259_s26), 63  ;;  %1457 = vmatprep.subr.bf16.mxu0 %v2656_v6  ;;  %v2682_v33 = vld [vmem:[%s3585_s3 + $0xa0] ss:$8 sps:$4 sm:$0xff]   ;;  %v2683_v34 = vld [vmem:[%s3585_s3 + $0xb4] ss:$8 sps:$4 sm:$0xff]   ;;  %v320_v4 = vshrl.u32 %v319_v63, 7 }
   0xe   : > { %s2260_s10 = sshll.u32 %s3591_s26, 3  ;;  %v2685_v36 = vld [vmem:[%s3585_s3 + $0xb0] ss:$8 sps:$4 sm:$0xff]   ;;  %v2686_v37 = vld [vmem:[%s3585_s3 + $0xc4] ss:$8 sps:$4 sm:$0xff]   ;;  %s2262_s11 = sshll.u32 %s3591_s26, 2 }
   0xf   : > { %s2793_s15 = scalar_lea.vmem %s3582_s0, %s2260_s10  ;;  %v2688_v39 = vld [vmem:[%s3585_s3 + $0xc0] ss:$8 sps:$4 sm:$0xff]   ;;  %v2689_v40 = vld [vmem:[%s3585_s3 + $0xd4] ss:$8 sps:$4 sm:$0xff]   ;;  %v2691_v41 = vld [vmem:[%s3585_s3 + $0xd0] ss:$8 sps:$4 sm:$0xff]   ;;  %s3519_s14 = scalar_lea.vmem %s3589_s7, %s2262_s11 }
  0x10   : > { %v283_v7 = vld [vmem:[%s2793_s15] sm:$0xff]  ;;  %v285_v8 = vld [vmem:[%s2793_s15 + $0x10] sm:$0xff]  ;;  %v284_v9 = vld [vmem:[%s2793_s15 + $0x8] sm:$0xff]  ;;  %1458 = vmatpush1.bf16.msra.mxu0 %v2658_v10 }
  0x11   : > { %890 = vperm.xlu0 %2597, %v283_v7   ;;  %626 = vperm.xlu1 %2596, %v283_v7   ;;  %v287_v13 = vld [vmem:[%s2793_s15 + $0x20] sm:$0xff]  ;;  %v286_v20 = vld [vmem:[%s2793_s15 + $0x18] sm:$0xff]  ;;  %v288_v23 = vld [vmem:[%s2793_s15 + $0x28] sm:$0xff] }
  0x12   : > { %1459 = vmatprep.subr.bf16.mxu0 %v2659_v11  ;;  %v2845_v26 = vld [vmem:[%s2793_s15 + $0x38] sm:$0xff]  ;;  %v2855_v29 = vld [vmem:[%s2793_s15 + $0x48] sm:$0xff]  ;;  %v289_v43 = vld [vmem:[%s2793_s15 + $0x30] sm:$0xff] }
  0x13   : > { %v2867_v32 = vld [vmem:[%s2793_s15 + $0x58] sm:$0xff]  ;;  %v2878_v35 = vld [vmem:[%s2793_s15 + $0x68] sm:$0xff]  ;;  %v291_v46 = vld [vmem:[%s2793_s15 + $0x40] sm:$0xff] }
  0x14   : > { %1460 = vmatpush1.bf16.msra.mxu0 %v2661_v12  ;;  %v2888_v38 = vld [vmem:[%s2793_s15 + $0x78] sm:$0xff]  ;;  %v2692_v42 = vld [vmem:[%s3585_s3 + $0xe4] ss:$8 sps:$4 sm:$0xff]   ;;  %v2694_v44 = vld [vmem:[%s3585_s3 + $0xe0] ss:$8 sps:$4 sm:$0xff]  }
  0x15   : > { %898 = vperm.xlu0 %2597, %v285_v8   ;;  %630 = vperm.xlu1 %2596, %v284_v9   ;;  %v2695_v45 = vld [vmem:[%s3585_s3 + $0xf4] ss:$8 sps:$4 sm:$0xff]   ;;  %v2697_v47 = vld [vmem:[%s3585_s3 + $0xf0] ss:$8 sps:$4 sm:$0xff]   ;;  %v295_v49 = vld [vmem:[%s2793_s15 + $0x60] sm:$0xff] }
  0x16   : > { %1461 = vmatprep.subr.bf16.mxu0 %v2662_v14  ;;  %v293_v48 = vld [vmem:[%s2793_s15 + $0x50] sm:$0xff]  ;;  %v2925_v51 = vld [vmem:[%s2793_s15 + $0x80] sm:$0xff]  ;;  %v2940_v54 = vld [vmem:[%s2793_s15 + $0x88] sm:$0xff] }
  0x17   : > { %v297_v50 = vld [vmem:[%s2793_s15 + $0x70] sm:$0xff]  ;;  %v2935_v53 = vld [vmem:[%s2793_s15 + $0xa0] sm:$0xff]  ;;  %v2946_v55 = vld [vmem:[%s2793_s15 + $0x98] sm:$0xff] }
  0x18   : > { %1462 = vmatpush1.bf16.msra.mxu0 %v2664_v15  ;;  %v2930_v52 = vld [vmem:[%s2793_s15 + $0x90] sm:$0xff]  ;;  %v2951_v56 = vld [vmem:[%s2793_s15 + $0xa8] sm:$0xff]  ;;  %v2956_v57 = vld [vmem:[%s2793_s15 + $0xb8] sm:$0xff] }
  0x19   : > { %906 = vperm.xlu0 %2597, %v287_v13   ;;  %2598 = vset.pattern.permute.xlu1 %v2722_v0  ;;  %v2961_v58 = vld [vmem:[%s2793_s15 + $0xc8] sm:$0xff]  ;;  %v2966_v59 = vld [vmem:[%s2793_s15 + $0xd8] sm:$0xff]  ;;  %v2972_v60 = vld [vmem:[%s2793_s15 + $0xb0] sm:$0xff] }
  0x1a   : > { %894 = vperm.xlu1 %2598, %v284_v9   ;;  %1463 = vmatprep.subr.bf16.mxu0 %v2665_v16  ;;  %v2978_v61 = vld [vmem:[%s2793_s15 + $0xc0] sm:$0xff]  ;;  %v2983_v62 = vld [vmem:[%s2793_s15 + $0xd0] sm:$0xff]  ;;  %v316_v12 = vld [vmem:[%s3583_s1 + $0x8] sm:$0xff] }
  0x1b   : > { %v315_v11 = vld [vmem:[%s3583_s1] sm:$0xff] }
  0x1c   : > { %1464 = vmatpush1.bf16.msra.mxu0 %v2667_v18  ;;  %v317_v14 = vld [vmem:[%s3584_s2] sm:$0x3]  ;;  %v1019_v18 = vsub.s32 2, %v320_v4 }
  0x1d   : > { %2604 = vset.pattern.permute.xlu0 %v2724_v17  ;;  %1465 = vmatprep.subr.bf16.mxu0 %v2668_v19 }
  0x1e   : > { %331 = vperm.xlu0 %2604, %v283_v7   ;;  %2599 = vset.pattern.permute.xlu1 %v2724_v17  ;;  %v2993_v7 = vsub.s32 0, %v320_v4 }
  0x1f   : > { %341 = vperm.xlu1 %2599, %v285_v8  }
  0x20   : > { %1466 = vmatpush1.bf16.msra.mxu0 %v2670_v21  ;;  %v3014_v15 = vrot.slane %v315_v11, %v2993_v7  ;;  %v3017_v16 = vrot.slane %v316_v12, %v2993_v7 }
  0x21   : > { %1467 = vmatprep.subr.bf16.mxu0 %v2671_v22  ;;  %v3030_v22 = vld [vmem:[%s2793_s15 + $0xe8] sm:$0xff] }
  0x22   : > { %336 = vperm.xlu0 %2604, %v284_v9   ;;  %v2999_v9 = vsub.s32 1, %v320_v4 }
  0x23   : > { %2600 = vset.pattern.permute.xlu1 %v2723_v1 }
  0x24   : > { %634 = vperm.xlu1 %2600, %v285_v8   ;;  %1468 = vmatpush1.bf16.msra.mxu0 %v2673_v24  ;;  %v2996_v8 = vld [vmem:[%s2793_s15 + $0xe0] sm:$0xff]  ;;  %v3021_v19 = vrot.slane %v315_v11, %v2999_v9  ;;  %v3027_v21 = vrot.slane %v317_v14, %v2999_v9 }
  0x25   : > { %1469 = vmatprep.subr.bf16.mxu0 %v2674_v25 }
  0x26   : > { %346 = vperm.xlu0 %2604, %v286_v20  }
  0x28   : > { %638 = vperm.xlu1 %2600, %v286_v20   ;;  %1470 = vmatpush1.bf16.msra.mxu0 %v2676_v27 }
  0x29   : > { %1471 = vmatprep.subr.bf16.mxu0 %v2677_v28  ;;  %v3039_v28 = vrot.slane %v315_v11, %v1019_v18 }
  0x2a   : > { %356 = vperm.xlu0 %2604, %v288_v23  }
  0x2c   : > { %2601 = vset.pattern.permute.xlu1 %v2722_v0  ;;  %1472 = vmatpush1.bf16.msra.mxu0 %v2679_v30 }
  0x2d   : > { %902 = vperm.xlu1 %2601, %v286_v20   ;;  %1473 = vmatprep.subr.bf16.mxu0 %v2680_v31  ;;  %v3024_v20 = vrot.slane %v317_v14, %v2993_v7 }
  0x2e   : > { %366 = vperm.xlu0 %2604, %v2845_v26  }
  0x30   : > { %1474 = vmatpush1.bf16.msra.mxu0 %v2682_v33  ;;  %v3046_v33 = vrot.slane %v316_v12, %v1019_v18 }
  0x31   : > { %2602 = vset.pattern.permute.xlu1 %v2724_v17  ;;  %1475 = vmatprep.subr.bf16.mxu0 %v2683_v34 }
  0x32   : > { %351 = vperm.xlu1 %2602, %v287_v13   ;;  %376 = vperm.xlu0 %2604, %v2855_v29  }
  0x34   : > { %1476 = vmatpush1.bf16.msra.mxu0 %v2685_v36 }
  0x35   : > { %1477 = vmatprep.subr.bf16.mxu0 %v2686_v37 }
  0x36   : > { %2603 = vset.pattern.permute.xlu1 %v2723_v1  ;;  %386 = vperm.xlu0 %2604, %v2867_v32  }
  0x37   : > { %642 = vperm.xlu1 %2603, %v287_v13  }
  0x38   : > { %1478 = vmatpush1.bf16.msra.mxu0 %v2688_v39 }
  0x39   : > { %1479 = vmatprep.subr.bf16.mxu0 %v2689_v40 }
  0x3a   : > { %396 = vperm.xlu0 %2604, %v2878_v35  }
  0x3b   : > { %646 = vperm.xlu1 %2603, %v288_v23  }
  0x3c   : > { %1480 = vmatpush1.bf16.msra.mxu0 %v2691_v41 }
  0x3d   : > { %1481 = vmatprep.subr.bf16.mxu0 %v2692_v42 }
  0x3e   : > { %406 = vperm.xlu0 %2604, %v2888_v38  }
  0x3f   : > { %2605 = vset.pattern.permute.xlu1 %v2722_v0 }
  0x40   : > { %910 = vperm.xlu1 %2605, %v288_v23   ;;  %1482 = vmatpush1.bf16.msra.mxu0 %v2694_v44  ;;  %v3033_v23 = vrot.slane %v316_v12, %v2999_v9 }
  0x41   : > { %1483 = vmatprep.subr.bf16.mxu0 %v2695_v45 }
  0x42   : > { %2619 = vset.pattern.permute.xlu0 %v2722_v0 }
  0x43   : > { %914 = vperm.xlu0 %2619, %v289_v43  }
  0x44   : > { %2606 = vset.pattern.permute.xlu1 %v2724_v17  ;;  %1484 = vmatpush1.bf16.msra.mxu0 %v2697_v47 }
  0x45   : > { %361 = vperm.xlu1 %2606, %v289_v43  }
  0x47   : > { %922 = vperm.xlu0 %2619, %v291_v46  }
  0x49   : > { %2607 = vset.pattern.permute.xlu1 %v2723_v1 }
  0x4a   : > { %650 = vperm.xlu1 %2607, %v289_v43  }
  0x4b   : > { %930 = vperm.xlu0 %2619, %v293_v48  }
  0x4e   : > { %654 = vperm.xlu1 %2607, %v2845_v26  }
  0x4f   : > { %938 = vperm.xlu0 %2619, %v295_v49  }
  0x52   : > { %2608 = vset.pattern.permute.xlu1 %v2722_v0 }
  0x53   : > { %918 = vperm.xlu1 %2608, %v2845_v26   ;;  %946 = vperm.xlu0 %2619, %v297_v50  }
  0x57   : > { %2609 = vset.pattern.permute.xlu1 %v2724_v17  ;;  %954 = vperm.xlu0 %2619, %v2925_v51  }
  0x58   : > { %371 = vperm.xlu1 %2609, %v291_v46  }
  0x5b   : > { %962 = vperm.xlu0 %2619, %v2930_v52  }
  0x5c   : > { %2610 = vset.pattern.permute.xlu1 %v2723_v1 }
  0x5d   : > { %658 = vperm.xlu1 %2610, %v291_v46  }
  0x5f   : > { %970 = vperm.xlu0 %2619, %v2935_v53  }
  0x61   : > { %662 = vperm.xlu1 %2610, %v2855_v29  }
  0x63   : > { %2630 = vset.pattern.permute.xlu0 %v2724_v17 }
  0x64   : > { %416 = vperm.xlu0 %2630, %v2940_v54  }
  0x65   : > { %2611 = vset.pattern.permute.xlu1 %v2722_v0 }
  0x66   : > { %926 = vperm.xlu1 %2611, %v2855_v29  }
  0x68   : > { %426 = vperm.xlu0 %2630, %v2946_v55  }
  0x6a   : > { %2612 = vset.pattern.permute.xlu1 %v2724_v17 }
  0x6b   : > { %381 = vperm.xlu1 %2612, %v293_v48  }
  0x6c   : > { %436 = vperm.xlu0 %2630, %v2951_v56  }
  0x6f   : > { %2613 = vset.pattern.permute.xlu1 %v2723_v1 }
  0x70   : > { %666 = vperm.xlu1 %2613, %v293_v48   ;;  %446 = vperm.xlu0 %2630, %v2956_v57  }
  0x74   : > { %670 = vperm.xlu1 %2613, %v2867_v32   ;;  %456 = vperm.xlu0 %2630, %v2961_v58  }
  0x78   : > { %2614 = vset.pattern.permute.xlu1 %v2722_v0  ;;  %466 = vperm.xlu0 %2630, %v2966_v59  }
  0x79   : > { %934 = vperm.xlu1 %2614, %v2867_v32  }
  0x7c   : > { %2639 = vset.pattern.permute.xlu0 %v2722_v0 }
  0x7d   : > { %2615 = vset.pattern.permute.xlu1 %v2724_v17  ;;  %978 = vperm.xlu0 %2639, %v2972_v60  }
  0x7e   : > { %391 = vperm.xlu1 %2615, %v295_v49  }
  0x81   : > { %986 = vperm.xlu0 %2639, %v2978_v61  }
  0x82   : > { %2616 = vset.pattern.permute.xlu1 %v2723_v1 }
  0x83   : > { %674 = vperm.xlu1 %2616, %v295_v49  }
  0x85   : > { %994 = vperm.xlu0 %2639, %v2983_v62  }
  0x87   : > { %678 = vperm.xlu1 %2616, %v2878_v35  }
  0x89   : > { %1002 = vperm.xlu0 %2639, %v2996_v8  }
  0x8b   : > { %2617 = vset.pattern.permute.xlu1 %v2722_v0 }
  0x8c   : > { %942 = vperm.xlu1 %2617, %v2878_v35  }
  0x8d   : > { %2644 = vset.pattern.permute.xlu0 %v2724_v17 }
  0x8e   : > { %476 = vperm.xlu0 %2644, %v3030_v22  }
  0x90   : > { %2618 = vset.pattern.permute.xlu1 %v2724_v17  ;;  %v627_v2 = vpop.permute.xlu1 %626  ;;  %v891_v3 = vpop.permute.xlu0 %890 }
  0x91   : > { %401 = vperm.xlu1 %2618, %v297_v50   ;;  %v761_v29 = vmul.f32 %v3021_v19, %v627_v2  ;;  %v762_v32 = vmul.f32 %v3033_v23, %v627_v2  ;;  %v1025_v34 = vmul.f32 %v3039_v28, %v891_v3  ;;  %v1026_v40 = vmul.f32 %v3046_v33, %v891_v3 }
  0x94   : > { %v631_v5 = vpop.permute.xlu1 %630  ;;  %v2990_v6 = vpop.permute.xlu0 %898 }
  0x95   : > { %2620 = vset.pattern.permute.xlu1 %v2723_v1  ;;  %v763_v41 = vmul.f32 %v3021_v19, %v631_v5  ;;  %v764_v44 = vmul.f32 %v3033_v23, %v631_v5  ;;  %v1030_v48 = vmul.f32 %v3046_v33, %v2990_v6 }
  0x96   : > { %682 = vperm.xlu1 %2620, %v297_v50  }
  0x98   : > { %v3001_v10 = vpop.permute.xlu0 %906 }
  0x99   : > { %v895_v13 = vpop.permute.xlu1 %894 }
  0x9a   : > { %686 = vperm.xlu1 %2620, %v2888_v38   ;;  %v1027_v49 = vmul.f32 %v3039_v28, %v895_v13  ;;  %v1028_v50 = vmul.f32 %v3046_v33, %v895_v13 }
  0x9d   : > { %v332_v24 = vpop.permute.xlu0 %331 }
  0x9e   : > { %v497_v25 = vmul.f32 %v3014_v15, %v332_v24  ;;  %v498_v26 = vmul.f32 %v3017_v16, %v332_v24  ;;  %2621 = vset.pattern.permute.xlu1 %v2722_v0  ;;  %v342_v27 = vpop.permute.xlu1 %341 }
  0x9f   : > { %950 = vperm.xlu1 %2621, %v2888_v38   ;;  %v502_v37 = vmul.f32 %v3017_v16, %v342_v27  ;;  %v501_v63 = vmul.f32 %v3014_v15, %v342_v27 }
  0xa0   : > { %v561_v30 = vadd.f32 %v497_v25, %v3024_v20  ;;  %v562_v31 = vadd.f32 %v498_v26, %v3027_v21 }
  0xa1   : > { %v337_v35 = vpop.permute.xlu0 %336  ;;  %v566_v3 = vadd.f32 %v502_v37, %v3027_v21 }
  0xa2   : > { %v825_v36 = vadd.f32 %v761_v29, %v561_v30  ;;  %v499_v39 = vmul.f32 %v3014_v15, %v337_v35  ;;  %v500_v38 = vmul.f32 %v3017_v16, %v337_v35  ;;  %v826_v43 = vadd.f32 %v762_v32, %v562_v31 }
  0xa3   : > { %2622 = vset.pattern.permute.xlu1 %v2724_v17  ;;  %v635_v42 = vpop.permute.xlu1 %634  ;;  %v565_v35 = vadd.f32 %v501_v63, %v3024_v20 }
  0xa4   : > { %v563_v45 = vadd.f32 %v499_v39, %v3024_v20  ;;  %v564_v46 = vadd.f32 %v500_v38, %v3027_v21  ;;  %v766_v47 = vmul.f32 %v3033_v23, %v635_v42  ;;  %411 = vperm.xlu1 %2622, %v2925_v51   ;;  %v1089_v11 = vadd.f32 %v1025_v34, %v825_v36 }
  0xa5   : > { %v347_v2 = vpop.permute.xlu0 %346  ;;  %v765_v12 = vmul.f32 %v3021_v19, %v635_v42  ;;  %v1090_v25 = vadd.f32 %v1026_v40, %v826_v43  ;;  %v1029_v39 = vmul.f32 %v3039_v28, %v2990_v6 }
  0xa6   : > { %v827_v4 = vadd.f32 %v763_v41, %v563_v45  ;;  %v503_v5 = vmul.f32 %v3014_v15, %v347_v2  ;;  %v504_v14 = vmul.f32 %v3017_v16, %v347_v2  ;;  %v828_v24 = vadd.f32 %v764_v44, %v564_v46  ;;  %v3079_v41 = vld [vmem:[%s2793_s15 + $0xf8] sm:$0xff] }
  0xa7   : > { %v639_v18 = vpop.permute.xlu1 %638  ;;  %v830_v26 = vadd.f32 %v766_v47, %v566_v3  ;;  %v1153_v36 = vmax.f32 %v1089_v11, 0.0  ;;  %v1154_v38 = vmax.f32 %v1090_v25, 0.0  ;;  %v829_v42 = vadd.f32 %v765_v12, %v565_v35  ;;  %486 = vperm.xlu0 %2644, %v3079_v41  }
  0xa8   : > { %v567_v13 = vadd.f32 %v503_v5, %v3024_v20  ;;  %v767_v27 = vmul.f32 %v3021_v19, %v639_v18  ;;  %2623 = vset.pattern.permute.xlu1 %v2723_v1  ;;  %v1091_v29 = vadd.f32 %v1027_v49, %v827_v4  ;;  %v568_v30 = vadd.f32 %v504_v14, %v3027_v21  ;;  %v3088_v4 = vld [vmem:[%s2793_s15 + $0xf0] sm:$0xff] }
  0xa9   : > { %v768_v31 = vmul.f32 %v3033_v23, %v639_v18  ;;  %690 = vperm.xlu1 %2623, %v2925_v51   ;;  %v1092_v32 = vadd.f32 %v1028_v50, %v828_v24  ;;  %v357_v34 = vpop.permute.xlu0 %356  ;;  %v1094_v46 = vadd.f32 %v1030_v48, %v830_v26  ;;  %v1093_v3 = vadd.f32 %v1029_v39, %v829_v42 }
  0xaa   : > { %v1155_v37 = vmax.f32 %v1091_v29, 0.0  ;;  %v831_v43 = vadd.f32 %v767_v27, %v567_v13  ;;  %v1033_v39 = vmul.f32 %v3039_v28, %v3001_v10 }
  0xab   : > { %v1156_v40 = vmax.f32 %v1092_v32, 0.0  ;;  %v832_v51 = vadd.f32 %v768_v31, %v568_v30  ;;  %2648 = vset.pattern.permute.xlu0 %v2722_v0  ;;  %v1158_v5 = vmax.f32 %v1094_v46, 0.0  ;;  %v1157_v24 = vmax.f32 %v1093_v3, 0.0 }
  0xac   : > { %v903_v44 = vpop.permute.xlu1 %902  ;;  %v1217_v45 = vpack.c.bf16 %v1155_v37, %v1153_v36  ;;  %1010 = vperm.xlu0 %2648, %v3088_v4   ;;  %v508_v31 = vmul.f32 %v3017_v16, %v357_v34 }
  0xad   : > { %v1031_v47 = vmul.f32 %v3039_v28, %v903_v44  ;;  %v1032_v49 = vmul.f32 %v3046_v33, %v903_v44  ;;  %694 = vperm.xlu1 %2623, %v2940_v54   ;;  %v1218_v6 = vpack.c.bf16 %v1156_v40, %v1154_v38  ;;  %v3085_v50 = vpop.permute.xlu0 %366  ;;  %v1034_v38 = vmul.f32 %v3046_v33, %v3001_v10 }
  0xaf   : > { %v1095_v63 = vadd.f32 %v1031_v47, %v831_v43  ;;  %v1096_v2 = vadd.f32 %v1032_v49, %v832_v51  ;;  %1485 = vmatprep.mubr.bf16.mxu0 %v1218_v6  ;;  %v572_v43 = vadd.f32 %v508_v31, %v3027_v21  ;;  %v512_v31 = vmul.f32 %v3017_v16, %v3085_v50 }
  0xb0   : > { %1486 = vmatmul.mubr.bf16.vlgmr.msra.gmra.mrb[0].mxu0 %v1217_v45 }
  0xb1   : > { %2624 = vset.pattern.permute.xlu1 %v2722_v0  ;;  %v352_v48 = vpop.permute.xlu1 %351  ;;  %v1160_v11 = vmax.f32 %v1096_v2, 0.0  ;;  %v1159_v12 = vmax.f32 %v1095_v63, 0.0  ;;  %v3094_v18 = vpop.permute.xlu0 %376 }
  0xb2   : > { %958 = vperm.xlu1 %2624, %v2940_v54   ;;  %v505_v25 = vmul.f32 %v3014_v15, %v352_v48  ;;  %v506_v26 = vmul.f32 %v3017_v16, %v352_v48  ;;  %v507_v54 = vmul.f32 %v3014_v15, %v357_v34 }
  0xb3   : > { %v1220_v14 = vpack.c.bf16 %v1160_v11, %v1158_v5  ;;  %v1219_v27 = vpack.c.bf16 %v1159_v12, %v1157_v24 }
  0xb4   : > { %v569_v32 = vadd.f32 %v505_v25, %v3024_v20  ;;  %v570_v35 = vadd.f32 %v506_v26, %v3027_v21  ;;  %v571_v34 = vadd.f32 %v507_v54, %v3024_v20 }
  0xb5   : > { %1495 = vmatprep.mubr.bf16.mxu0 %v1220_v14  ;;  %v3106_v36 = vpop.permute.xlu0 %386 }
  0xb6   : > { %2625 = vset.pattern.permute.xlu1 %v2724_v17  ;;  %v643_v13 = vpop.permute.xlu1 %642 }
  0xb7   : > { %v769_v29 = vmul.f32 %v3021_v19, %v643_v13  ;;  %v770_v30 = vmul.f32 %v3033_v23, %v643_v13  ;;  %421 = vperm.xlu1 %2625, %v2930_v52  }
  0xb8   : > { %1496 = vmatmul.mubr.bf16.gmra.mrb[4].mxu0 %v1219_v27 }
  0xb9   : > { %v833_v40 = vadd.f32 %v769_v29, %v569_v32  ;;  %v834_v42 = vadd.f32 %v770_v30, %v570_v35  ;;  %v3118_v51 = vpop.permute.xlu0 %396 }
  0xba   : > { %v647_v37 = vpop.permute.xlu1 %646 }
  0xbb   : > { %2626 = vset.pattern.permute.xlu1 %v2723_v1  ;;  %v771_v44 = vmul.f32 %v3021_v19, %v647_v37  ;;  %v772_v45 = vmul.f32 %v3033_v23, %v647_v37  ;;  %v1098_v47 = vadd.f32 %v1034_v38, %v834_v42  ;;  %v1097_v49 = vadd.f32 %v1033_v39, %v833_v40 }
  0xbc   : > { %698 = vperm.xlu1 %2626, %v2930_v52  }
  0xbd   : > { %v835_v10 = vadd.f32 %v771_v44, %v571_v34  ;;  %v836_v6 = vadd.f32 %v772_v45, %v572_v43  ;;  %v1162_v11 = vmax.f32 %v1098_v47, 0.0  ;;  %v1161_v12 = vmax.f32 %v1097_v49, 0.0  ;;  %v3125_v24 = vpop.permute.xlu0 %406 }
  0xbe   : > { %v576_v44 = vadd.f32 %v512_v31, %v3027_v21 }
  0xbf   : > { %v911_v46 = vpop.permute.xlu1 %910 }
  0xc0   : > { %v1035_v63 = vmul.f32 %v3039_v28, %v911_v46  ;;  %v1036_v2 = vmul.f32 %v3046_v33, %v911_v46  ;;  %702 = vperm.xlu1 %2626, %v2946_v55  }
  0xc2   : > { %v1099_v3 = vadd.f32 %v1035_v63, %v835_v10  ;;  %v1100_v48 = vadd.f32 %v1036_v2, %v836_v6  ;;  %v915_v32 = vpop.permute.xlu0 %914 }
  0xc3   : > { %v1037_v42 = vmul.f32 %v3039_v28, %v915_v32  ;;  %v1038_v34 = vmul.f32 %v3046_v33, %v915_v32 }
  0xc4   : > { %2627 = vset.pattern.permute.xlu1 %v2722_v0  ;;  %v362_v5 = vpop.permute.xlu1 %361  ;;  %v1164_v52 = vmax.f32 %v1100_v48, 0.0  ;;  %v1163_v14 = vmax.f32 %v1099_v3, 0.0 }
  0xc5   : > { %966 = vperm.xlu1 %2627, %v2946_v55   ;;  %v509_v13 = vmul.f32 %v3014_v15, %v362_v5  ;;  %v510_v27 = vmul.f32 %v3017_v16, %v362_v5  ;;  %v511_v55 = vmul.f32 %v3014_v15, %v3085_v50 }
  0xc6   : > { %v1222_v25 = vpack.c.bf16 %v1164_v52, %v1162_v11  ;;  %v1221_v26 = vpack.c.bf16 %v1163_v14, %v1161_v12 }
  0xc7   : > { %v573_v35 = vadd.f32 %v509_v13, %v3024_v20  ;;  %v574_v37 = vadd.f32 %v510_v27, %v3027_v21  ;;  %v575_v43 = vadd.f32 %v511_v55, %v3024_v20  ;;  %v923_v55 = vpop.permute.xlu0 %922 }
  0xc8   : > { %1505 = vmatprep.mubr.bf16.mxu0 %v1222_v25 }
  0xc9   : > { %2628 = vset.pattern.permute.xlu1 %v2724_v17  ;;  %1506 = vmatmul.mubr.bf16.gmra.mrb[8].mxu0 %v1221_v26  ;;  %v651_v29 = vpop.permute.xlu1 %650 }
  0xca   : > { %v773_v30 = vmul.f32 %v3021_v19, %v651_v29  ;;  %v774_v54 = vmul.f32 %v3033_v23, %v651_v29  ;;  %431 = vperm.xlu1 %2628, %v2935_v53  }
  0xcc   : > { %v837_v38 = vadd.f32 %v773_v30, %v573_v35  ;;  %v838_v40 = vadd.f32 %v774_v54, %v574_v37  ;;  %v516_v54 = vmul.f32 %v3017_v16, %v3094_v18 }
  0xcd   : > { %v655_v39 = vpop.permute.xlu1 %654 }
  0xce   : > { %2629 = vset.pattern.permute.xlu1 %v2723_v1  ;;  %v775_v50 = vmul.f32 %v3021_v19, %v655_v39  ;;  %v776_v45 = vmul.f32 %v3033_v23, %v655_v39  ;;  %v1101_v46 = vadd.f32 %v1037_v42, %v837_v38  ;;  %v1102_v47 = vadd.f32 %v1038_v34, %v838_v40 }
  0xcf   : > { %706 = vperm.xlu1 %2629, %v2935_v53   ;;  %v1041_v38 = vmul.f32 %v3039_v28, %v923_v55  ;;  %v1042_v40 = vmul.f32 %v3046_v33, %v923_v55  ;;  %v580_v34 = vadd.f32 %v516_v54, %v3027_v21  ;;  %v2701_v54 = vld [vmem:[%s3587_s5 + $0x8] sm:$0xff]  }
  0xd0   : > { %v839_v10 = vadd.f32 %v775_v50, %v575_v43  ;;  %v840_v6 = vadd.f32 %v776_v45, %v576_v44  ;;  %v1165_v5 = vmax.f32 %v1101_v46, 0.0  ;;  %v1166_v11 = vmax.f32 %v1102_v47, 0.0 }
  0xd2   : > { %v919_v49 = vpop.permute.xlu1 %918 }
  0xd3   : > { %v1039_v63 = vmul.f32 %v3039_v28, %v919_v49  ;;  %v1040_v2 = vmul.f32 %v3046_v33, %v919_v49  ;;  %710 = vperm.xlu1 %2629, %v2951_v56  }
  0xd5   : > { %v1103_v3 = vadd.f32 %v1039_v63, %v839_v10  ;;  %v1104_v48 = vadd.f32 %v1040_v2, %v840_v6 }
  0xd7   : > { %v1167_v52 = vmax.f32 %v1103_v3, 0.0  ;;  %v1168_v12 = vmax.f32 %v1104_v48, 0.0  ;;  %2631 = vset.pattern.permute.xlu1 %v2722_v0  ;;  %v372_v53 = vpop.permute.xlu1 %371 }
  0xd8   : > { %974 = vperm.xlu1 %2631, %v2951_v56   ;;  %v513_v26 = vmul.f32 %v3014_v15, %v372_v53  ;;  %v514_v13 = vmul.f32 %v3017_v16, %v372_v53  ;;  %v515_v56 = vmul.f32 %v3014_v15, %v3094_v18  ;;  %v2699_v53 = vld [vmem:[%s3587_s5] sm:$0xff]  }
  0xd9   : > { %v1224_v14 = vpack.c.bf16 %v1168_v12, %v1166_v11  ;;  %v1223_v25 = vpack.c.bf16 %v1167_v52, %v1165_v5  ;;  %v2698_v12 = vld [vmem:[%s3587_s5 + $0x40] sm:$0xff]  }
  0xda   : > { %v577_v31 = vadd.f32 %v513_v26, %v3024_v20  ;;  %v578_v32 = vadd.f32 %v514_v13, %v3027_v21  ;;  %v579_v42 = vadd.f32 %v515_v56, %v3024_v20  ;;  %2473 = vmatprep.subr.bf16.mxu1 %v2698_v12  ;;  %v519_v26 = vmul.f32 %v3014_v15, %v3106_v36  ;;  %v2707_v12 = vld [vmem:[%s3587_s5 + $0x20] sm:$0xff]  }
  0xdb   : > { %1515 = vmatprep.mubr.bf16.mxu0 %v1224_v14  ;;  %v520_v56 = vmul.f32 %v3017_v16, %v3106_v36  ;;  %2474 = vmatpush3.bf16.msra.mxu1 %v2699_v53 }
  0xdc   : > { %2632 = vset.pattern.permute.xlu1 %v2724_v17  ;;  %1516 = vmatmul.mubr.bf16.gmra.mrb[12].mxu0 %v1223_v25  ;;  %v659_v27 = vpop.permute.xlu1 %658 }
  0xdd   : > { %v777_v29 = vmul.f32 %v3021_v19, %v659_v27  ;;  %v778_v30 = vmul.f32 %v3033_v23, %v659_v27  ;;  %441 = vperm.xlu1 %2632, %v2972_v60  }
  0xdf   : > { %v841_v37 = vadd.f32 %v777_v29, %v577_v31  ;;  %v842_v39 = vadd.f32 %v778_v30, %v578_v32  ;;  %v931_v29 = vpop.permute.xlu0 %930  ;;  %v2700_v30 = vld [vmem:[%s3587_s5 + $0x48] sm:$0xff]   ;;  %v583_v32 = vadd.f32 %v519_v26, %v3024_v20 }
  0xe0   : > { %v663_v35 = vpop.permute.xlu1 %662  ;;  %2475 = vmatprep.subr.bf16.mxu1 %v2700_v30  ;;  %v523_v30 = vmul.f32 %v3014_v15, %v3118_v51 }
  0xe1   : > { %2633 = vset.pattern.permute.xlu1 %v2723_v1  ;;  %v779_v18 = vmul.f32 %v3021_v19, %v663_v35  ;;  %v780_v43 = vmul.f32 %v3033_v23, %v663_v35  ;;  %v1105_v44 = vadd.f32 %v1041_v38, %v841_v37  ;;  %v1106_v50 = vadd.f32 %v1042_v40, %v842_v39 }
  0xe2   : > { %714 = vperm.xlu1 %2633, %v2972_v60   ;;  %v1045_v35 = vmul.f32 %v3039_v28, %v931_v29  ;;  %v1046_v40 = vmul.f32 %v3046_v33, %v931_v29  ;;  %2476 = vmatpush3.bf16.msra.mxu1 %v2701_v54 }
  0xe3   : > { %v843_v46 = vadd.f32 %v779_v18, %v579_v42  ;;  %v844_v47 = vadd.f32 %v780_v43, %v580_v34  ;;  %v1169_v2 = vmax.f32 %v1105_v44, 0.0  ;;  %v1170_v3 = vmax.f32 %v1106_v50, 0.0  ;;  %v2702_v42 = vld [vmem:[%s3587_s5 + $0x50] sm:$0xff]   ;;  %v939_v54 = vpop.permute.xlu0 %938 }
  0xe4   : > { %v584_v34 = vadd.f32 %v520_v56, %v3027_v21  ;;  %v2703_v43 = vld [vmem:[%s3587_s5 + $0x10] sm:$0xff]   ;;  %2477 = vmatprep.subr.bf16.mxu1 %v2702_v42  ;;  %v524_v56 = vmul.f32 %v3017_v16, %v3118_v51  ;;  %v1049_v51 = vmul.f32 %v3039_v28, %v939_v54 }
  0xe5   : > { %v927_v45 = vpop.permute.xlu1 %926 }
  0xe6   : > { %v1043_v49 = vmul.f32 %v3039_v28, %v927_v45  ;;  %v1044_v10 = vmul.f32 %v3046_v33, %v927_v45  ;;  %718 = vperm.xlu1 %2633, %v2956_v57   ;;  %2478 = vmatpush3.bf16.msra.mxu1 %v2703_v43  ;;  %v588_v42 = vadd.f32 %v524_v56, %v3027_v21  ;;  %v2712_v43 = vld [vmem:[%s3587_s5 + $0x78] sm:$0xff]  }
  0xe8   : > { %v1107_v6 = vadd.f32 %v1043_v49, %v843_v46  ;;  %v1108_v63 = vadd.f32 %v1044_v10, %v844_v47  ;;  %v2704_v47 = vld [vmem:[%s3587_s5 + $0x58] sm:$0xff]  }
  0xe9   : > { %2479 = vmatprep.subr.bf16.mxu1 %v2704_v47 }
  0xea   : > { %v1171_v48 = vmax.f32 %v1107_v6, 0.0  ;;  %v1172_v5 = vmax.f32 %v1108_v63, 0.0  ;;  %2634 = vset.pattern.permute.xlu1 %v2722_v0  ;;  %v382_v60 = vpop.permute.xlu1 %381 }
  0xeb   : > { %982 = vperm.xlu1 %2634, %v2956_v57   ;;  %v517_v14 = vmul.f32 %v3014_v15, %v382_v60  ;;  %v518_v25 = vmul.f32 %v3017_v16, %v382_v60 }
  0xec   : > { %v1226_v11 = vpack.c.bf16 %v1172_v5, %v1170_v3  ;;  %v1225_v52 = vpack.c.bf16 %v1171_v48, %v1169_v2  ;;  %v2706_v3 = vld [vmem:[%s3587_s5 + $0x60] sm:$0xff]  }
  0xed   : > { %v581_v55 = vadd.f32 %v517_v14, %v3024_v20  ;;  %v582_v31 = vadd.f32 %v518_v25, %v3027_v21  ;;  %v2708_v25 = vld [vmem:[%s3587_s5 + $0x68] sm:$0xff]  }
  0xee   : > { %1525 = vmatprep.mubr.bf16.mxu0 %v1226_v11 }
  0xef   : > { %2635 = vset.pattern.permute.xlu1 %v2724_v17  ;;  %1526 = vmatmul.mubr.bf16.gmra.mrb[16].mxu0 %v1225_v52  ;;  %v667_v57 = vpop.permute.xlu1 %666 }
  0xf0   : > { %v781_v13 = vmul.f32 %v3021_v19, %v667_v57  ;;  %v782_v27 = vmul.f32 %v3033_v23, %v667_v57  ;;  %451 = vperm.xlu1 %2635, %v2978_v61  }
  0xf2   : > { %v845_v39 = vadd.f32 %v781_v13, %v581_v55  ;;  %v846_v38 = vadd.f32 %v782_v27, %v582_v31  ;;  %v2709_v13 = vld [vmem:[%s3587_s5 + $0x28] sm:$0xff]   ;;  %v2710_v55 = vld [vmem:[%s3587_s5 + $0x70] sm:$0xff]  }
  0xf3   : > { %v671_v37 = vpop.permute.xlu1 %670 }
  0xf4   : > { %v783_v36 = vmul.f32 %v3021_v19, %v671_v37  ;;  %2636 = vset.pattern.permute.xlu1 %v2723_v1  ;;  %v784_v18 = vmul.f32 %v3033_v23, %v671_v37  ;;  %v1109_v44 = vadd.f32 %v1045_v35, %v845_v39  ;;  %v1110_v50 = vadd.f32 %v1046_v40, %v846_v38  ;;  %v2711_v35 = vld [vmem:[%s3587_s5 + $0x30] sm:$0xff]  }
  0xf5   : > { %722 = vperm.xlu1 %2636, %v2978_v61   ;;  %v2705_v61 = vld [vmem:[%s3587_s5 + $0x18] sm:$0xff]   ;;  %v1050_v40 = vmul.f32 %v3046_v33, %v939_v54 }
  0xf6   : > { %v847_v45 = vadd.f32 %v783_v36, %v583_v32  ;;  %v848_v49 = vadd.f32 %v784_v18, %v584_v34  ;;  %v1173_v48 = vmax.f32 %v1109_v44, 0.0  ;;  %v1174_v5 = vmax.f32 %v1110_v50, 0.0  ;;  %2480 = vmatpush3.bf16.msra.mxu1 %v2705_v61  ;;  %v2713_v44 = vld [vmem:[%s3587_s5 + $0x38] sm:$0xff]  }
  0xf7   : > { %2481 = vmatprep.subr.bf16.mxu1 %v2706_v3  ;;  %v587_v36 = vadd.f32 %v523_v30, %v3024_v20 }
  0xf8   : > { %v935_v46 = vpop.permute.xlu1 %934 }
  0xf9   : > { %v1047_v10 = vmul.f32 %v3039_v28, %v935_v46  ;;  %v1048_v6 = vmul.f32 %v3046_v33, %v935_v46  ;;  %726 = vperm.xlu1 %2636, %v2961_v58  }
  0xfa   : > { %2482 = vmatpush3.bf16.msra.mxu1 %v2707_v12 }
  0xfb   : > { %v1111_v63 = vadd.f32 %v1047_v10, %v847_v45  ;;  %v1112_v2 = vadd.f32 %v1048_v6, %v848_v49  ;;  %2483 = vmatprep.subr.bf16.mxu1 %v2708_v25 }
  0xfd   : > { %v1175_v60 = vmax.f32 %v1111_v63, 0.0  ;;  %v1176_v11 = vmax.f32 %v1112_v2, 0.0  ;;  %2637 = vset.pattern.permute.xlu1 %v2722_v0  ;;  %v392_v52 = vpop.permute.xlu1 %391 }
  0xfe   : > { %990 = vperm.xlu1 %2637, %v2961_v58   ;;  %v521_v26 = vmul.f32 %v3014_v15, %v392_v52  ;;  %v522_v57 = vmul.f32 %v3017_v16, %v392_v52  ;;  %2484 = vmatpush3.bf16.msra.mxu1 %v2709_v13  ;;  %v528_v13 = vmul.f32 %v3017_v16, %v3125_v24 }
  0xff   : > { %v1228_v53 = vpack.c.bf16 %v1176_v11, %v1174_v5  ;;  %v1227_v14 = vpack.c.bf16 %v1175_v60, %v1173_v48  ;;  %2485 = vmatprep.subr.bf16.mxu1 %v2710_v55  ;;  %v947_v60 = vpop.permute.xlu0 %946 }
 0x100   : > { %v585_v31 = vadd.f32 %v521_v26, %v3024_v20  ;;  %v586_v32 = vadd.f32 %v522_v57, %v3027_v21  ;;  %v1053_v54 = vmul.f32 %v3039_v28, %v947_v60  ;;  %v1054_v55 = vmul.f32 %v3046_v33, %v947_v60 }
 0x101   : > { %1535 = vmatprep.mubr.bf16.mxu0 %v1228_v53 }
 0x102   : > { %2638 = vset.pattern.permute.xlu1 %v2724_v17  ;;  %1536 = vmatmul.mubr.bf16.gmra.mrb[20].mxu0 %v1227_v14  ;;  %v675_v58 = vpop.permute.xlu1 %674 }
 0x103   : > { %v785_v27 = vmul.f32 %v3021_v19, %v675_v58  ;;  %v786_v29 = vmul.f32 %v3033_v23, %v675_v58  ;;  %461 = vperm.xlu1 %2638, %v2983_v62   ;;  %2486 = vmatpush3.bf16.msra.mxu1 %v2711_v35  ;;  %v955_v25 = vpop.permute.xlu0 %954 }
 0x104   : > { %2487 = vmatprep.subr.bf16.mxu1 %v2712_v43 }
 0x105   : > { %v849_v39 = vadd.f32 %v785_v27, %v585_v31  ;;  %v850_v38 = vadd.f32 %v786_v29, %v586_v32  ;;  %v592_v32 = vadd.f32 %v528_v13, %v3027_v21 }
 0x106   : > { %v679_v37 = vpop.permute.xlu1 %678 }
 0x107   : > { %2640 = vset.pattern.permute.xlu1 %v2723_v1  ;;  %v787_v34 = vmul.f32 %v3021_v19, %v679_v37  ;;  %v788_v18 = vmul.f32 %v3033_v23, %v679_v37  ;;  %v1113_v50 = vadd.f32 %v1049_v51, %v849_v39  ;;  %v1114_v45 = vadd.f32 %v1050_v40, %v850_v38  ;;  %v3295_v37 = vpop.permute.xlu0 %962 }
 0x108   : > { %730 = vperm.xlu1 %2640, %v2983_v62   ;;  %2488 = vmatpush3.bf16.msra.mxu1 %v2713_v44 }
 0x109   : > { %v851_v47 = vadd.f32 %v787_v34, %v587_v36  ;;  %v852_v49 = vadd.f32 %v788_v18, %v588_v42  ;;  %v1177_v63 = vmax.f32 %v1113_v50, 0.0  ;;  %v1178_v2 = vmax.f32 %v1114_v45, 0.0 }
 0x10b   : > { %v943_v46 = vpop.permute.xlu1 %942  ;;  %v3300_v44 = vpop.permute.xlu0 %970 }
 0x10c   : > { %v1051_v10 = vmul.f32 %v3039_v28, %v943_v46  ;;  %v1052_v6 = vmul.f32 %v3046_v33, %v943_v46  ;;  %734 = vperm.xlu1 %2640, %v2966_v59  }
 0x10e   : > { %v1115_v62 = vadd.f32 %v1051_v10, %v851_v47  ;;  %v1116_v61 = vadd.f32 %v1052_v6, %v852_v49 }
 0x110   : > { %v1179_v3 = vmax.f32 %v1115_v62, 0.0  ;;  %v1180_v48 = vmax.f32 %v1116_v61, 0.0  ;;  %2641 = vset.pattern.permute.xlu1 %v2722_v0  ;;  %v402_v5 = vpop.permute.xlu1 %401  ;;  %v417_v61 = vpop.permute.xlu0 %416 }
 0x111   : > { %998 = vperm.xlu1 %2641, %v2966_v59   ;;  %v525_v12 = vmul.f32 %v3014_v15, %v402_v5  ;;  %v526_v53 = vmul.f32 %v3017_v16, %v402_v5  ;;  %v527_v59 = vmul.f32 %v3014_v15, %v3125_v24 }
 0x112   : > { %v1230_v11 = vpack.c.bf16 %v1180_v48, %v1178_v2  ;;  %v1229_v52 = vpack.c.bf16 %v1179_v3, %v1177_v63  ;;  %v532_v48 = vmul.f32 %v3017_v16, %v417_v61 }
 0x113   : > { %v589_v58 = vadd.f32 %v525_v12, %v3024_v20  ;;  %v590_v27 = vadd.f32 %v526_v53, %v3027_v21  ;;  %v591_v31 = vadd.f32 %v527_v59, %v3024_v20 }
 0x114   : > { %1545 = vmatprep.mubr.bf16.mxu0 %v1230_v11 }
 0x115   : > { %2642 = vset.pattern.permute.xlu1 %v2724_v17  ;;  %1546 = vmatmul.mubr.bf16.gmra.mrb[24].mxu0 %v1229_v52  ;;  %v683_v14 = vpop.permute.xlu1 %682  ;;  %v1057_v52 = vmul.f32 %v3039_v28, %v955_v25 }
 0x116   : > { %v789_v26 = vmul.f32 %v3021_v19, %v683_v14  ;;  %v790_v57 = vmul.f32 %v3033_v23, %v683_v14  ;;  %471 = vperm.xlu1 %2642, %v2996_v8  }
 0x118   : > { %v853_v30 = vadd.f32 %v789_v26, %v589_v58  ;;  %v854_v56 = vadd.f32 %v790_v57, %v590_v27  ;;  %v596_v26 = vadd.f32 %v532_v48, %v3027_v21 }
 0x119   : > { %v687_v29 = vpop.permute.xlu1 %686 }
 0x11a   : > { %2643 = vset.pattern.permute.xlu1 %v2723_v1  ;;  %v791_v35 = vmul.f32 %v3021_v19, %v687_v29  ;;  %v792_v24 = vmul.f32 %v3033_v23, %v687_v29  ;;  %v1117_v39 = vadd.f32 %v1053_v54, %v853_v30  ;;  %v1118_v38 = vadd.f32 %v1054_v55, %v854_v56 }
 0x11b   : > { %738 = vperm.xlu1 %2643, %v2996_v8  }
 0x11c   : > { %v855_v40 = vadd.f32 %v791_v35, %v591_v31  ;;  %v856_v36 = vadd.f32 %v792_v24, %v592_v32  ;;  %v1181_v50 = vmax.f32 %v1117_v39, 0.0  ;;  %v1182_v45 = vmax.f32 %v1118_v38, 0.0 }
 0x11e   : > { %v951_v51 = vpop.permute.xlu1 %950 }
 0x11f   : > { %v1055_v42 = vmul.f32 %v3039_v28, %v951_v51  ;;  %v1056_v34 = vmul.f32 %v3046_v33, %v951_v51  ;;  %742 = vperm.xlu1 %2643, %v3030_v22  }
 0x121   : > { %v1119_v18 = vadd.f32 %v1055_v42, %v855_v40  ;;  %v1120_v43 = vadd.f32 %v1056_v34, %v856_v36  ;;  %v427_v40 = vpop.permute.xlu0 %426 }
 0x123   : > { %v1183_v8 = vmax.f32 %v1119_v18, 0.0  ;;  %v1184_v46 = vmax.f32 %v1120_v43, 0.0  ;;  %2645 = vset.pattern.permute.xlu1 %v2722_v0  ;;  %v412_v47 = vpop.permute.xlu1 %411  ;;  %v536_v18 = vmul.f32 %v3017_v16, %v427_v40 }
 0x124   : > { %1006 = vperm.xlu1 %2645, %v3030_v22   ;;  %v529_v6 = vmul.f32 %v3014_v15, %v412_v47  ;;  %v530_v62 = vmul.f32 %v3017_v16, %v412_v47  ;;  %v531_v22 = vmul.f32 %v3014_v15, %v417_v61 }
 0x125   : > { %v1232_v49 = vpack.c.bf16 %v1184_v46, %v1182_v45  ;;  %v1231_v10 = vpack.c.bf16 %v1183_v8, %v1181_v50  ;;  %v1061_v45 = vmul.f32 %v3039_v28, %v3295_v37  ;;  %v1062_v8 = vmul.f32 %v3046_v33, %v3295_v37 }
 0x126   : > { %v593_v5 = vadd.f32 %v529_v6, %v3024_v20  ;;  %v594_v60 = vadd.f32 %v530_v62, %v3027_v21  ;;  %v595_v14 = vadd.f32 %v531_v22, %v3024_v20 }
 0x127   : > { %1555 = vmatprep.mubr.bf16.mxu0 %v1232_v49 }
 0x128   : > { %2646 = vset.pattern.permute.xlu1 %v2724_v17  ;;  %1556 = vmatmul.mubr.bf16.gmra.mrb[28].mxu0 %v1231_v10  ;;  %v691_v63 = vpop.permute.xlu1 %690  ;;  %v1058_v17 = vmul.f32 %v3046_v33, %v955_v25  ;;  %v600_v10 = vadd.f32 %v536_v18, %v3027_v21 }
 0x129   : > { %v793_v2 = vmul.f32 %v3021_v19, %v691_v63  ;;  %v794_v3 = vmul.f32 %v3033_v23, %v691_v63  ;;  %481 = vperm.xlu1 %2646, %v3088_v4  }
 0x12b   : > { %v857_v12 = vadd.f32 %v793_v2, %v593_v5  ;;  %v858_v53 = vadd.f32 %v794_v3, %v594_v60 }
 0x12c   : > { %v695_v11 = vpop.permute.xlu1 %694 }
 0x12d   : > { %2647 = vset.pattern.permute.xlu1 %v2723_v1  ;;  %v795_v57 = vmul.f32 %v3021_v19, %v695_v11  ;;  %v796_v59 = vmul.f32 %v3033_v23, %v695_v11  ;;  %v1121_v13 = vadd.f32 %v1057_v52, %v857_v12  ;;  %v1122_v58 = vadd.f32 %v1058_v17, %v858_v53 }
 0x12e   : > { %746 = vperm.xlu1 %2647, %v3088_v4  }
 0x12f   : > { %v859_v29 = vadd.f32 %v795_v57, %v595_v14  ;;  %v860_v30 = vadd.f32 %v796_v59, %v596_v26  ;;  %v1186_v35 = vmax.f32 %v1122_v58, 0.0  ;;  %v1185_v4 = vmax.f32 %v1121_v13, 0.0  ;;  %v437_v13 = vpop.permute.xlu0 %436 }
 0x131   : > { %v959_v27 = vpop.permute.xlu1 %958 }
 0x132   : > { %v1059_v25 = vmul.f32 %v3039_v28, %v959_v27  ;;  %v1060_v56 = vmul.f32 %v3046_v33, %v959_v27  ;;  %750 = vperm.xlu1 %2647, %v3079_v41  }
 0x134   : > { %v1123_v1 = vadd.f32 %v1059_v25, %v859_v29  ;;  %v1124_v54 = vadd.f32 %v1060_v56, %v860_v30  ;;  %v539_v30 = vmul.f32 %v3014_v15, %v437_v13  ;;  %v540_v25 = vmul.f32 %v3017_v16, %v437_v13 }
 0x136   : > { %v1187_v55 = vmax.f32 %v1123_v1, 0.0  ;;  %v1188_v31 = vmax.f32 %v1124_v54, 0.0  ;;  %2649 = vset.pattern.permute.xlu1 %v2722_v0  ;;  %v422_v32 = vpop.permute.xlu1 %421  ;;  %v535_v0 = vmul.f32 %v3014_v15, %v427_v40  ;;  %v447_v54 = vpop.permute.xlu0 %446 }
 0x137   : > { %1014 = vperm.xlu1 %2649, %v3079_v41   ;;  %v533_v38 = vmul.f32 %v3014_v15, %v422_v32  ;;  %v534_v51 = vmul.f32 %v3017_v16, %v422_v32  ;;  %v1066_v32 = vmul.f32 %v3046_v33, %v3300_v44 }
 0x138   : > { %v1234_v24 = vpack.c.bf16 %v1188_v31, %v1186_v35  ;;  %v1233_v39 = vpack.c.bf16 %v1187_v55, %v1185_v4  ;;  %v599_v49 = vadd.f32 %v535_v0, %v3024_v20  ;;  %v1065_v31 = vmul.f32 %v3039_v28, %v3300_v44 }
 0x139   : > { %v597_v41 = vadd.f32 %v533_v38, %v3024_v20  ;;  %v598_v43 = vadd.f32 %v534_v51, %v3027_v21 }
 0x13a   : > { %1565 = vmatprep.mubr.bf16.mxu0 %v1234_v24  ;;  %v603_v24 = vadd.f32 %v539_v30, %v3024_v20 }
 0x13b   : > { %1566 = vmatmul.mubr.bf16.gmra.mrb[32].mxu0 %v1233_v39  ;;  %v699_v36 = vpop.permute.xlu1 %698  ;;  %v604_v39 = vadd.f32 %v540_v25, %v3027_v21 }
 0x13c   : > { %v797_v42 = vmul.f32 %v3021_v19, %v699_v36  ;;  %v798_v34 = vmul.f32 %v3033_v23, %v699_v36 }
 0x13e   : > { %v861_v46 = vadd.f32 %v797_v42, %v597_v41  ;;  %v862_v47 = vadd.f32 %v798_v34, %v598_v43  ;;  %v457_v34 = vpop.permute.xlu0 %456 }
 0x13f   : > { %v703_v50 = vpop.permute.xlu1 %702 }
 0x140   : > { %v799_v6 = vmul.f32 %v3021_v19, %v703_v50  ;;  %v800_v62 = vmul.f32 %v3033_v23, %v703_v50  ;;  %v1125_v61 = vadd.f32 %v1061_v45, %v861_v46  ;;  %v1126_v63 = vadd.f32 %v1062_v8, %v862_v47 }
 0x142   : > { %v863_v3 = vadd.f32 %v799_v6, %v599_v49  ;;  %v864_v22 = vadd.f32 %v800_v62, %v600_v10  ;;  %v1190_v12 = vmax.f32 %v1126_v63, 0.0  ;;  %v1189_v53 = vmax.f32 %v1125_v61, 0.0  ;;  %v3363_v10 = vpop.permute.xlu0 %466 }
 0x144   : > { %v967_v2 = vpop.permute.xlu1 %966 }
 0x145   : > { %v1063_v48 = vmul.f32 %v3039_v28, %v967_v2  ;;  %v1064_v5 = vmul.f32 %v3046_v33, %v967_v2 }
 0x147   : > { %v1127_v37 = vadd.f32 %v1063_v48, %v863_v3  ;;  %v1128_v60 = vadd.f32 %v1064_v5, %v864_v22  ;;  %v543_v48 = vmul.f32 %v3014_v15, %v447_v54  ;;  %v544_v5 = vmul.f32 %v3017_v16, %v447_v54 }
 0x149   : > { %v1191_v11 = vmax.f32 %v1127_v37, 0.0  ;;  %v1192_v52 = vmax.f32 %v1128_v60, 0.0  ;;  %v432_v17 = vpop.permute.xlu1 %431  ;;  %v979_v37 = vpop.permute.xlu0 %978 }
 0x14a   : > { %v537_v57 = vmul.f32 %v3014_v15, %v432_v17  ;;  %v538_v59 = vmul.f32 %v3017_v16, %v432_v17 }
 0x14b   : > { %v1236_v14 = vpack.c.bf16 %v1192_v52, %v1190_v12  ;;  %v1235_v26 = vpack.c.bf16 %v1191_v11, %v1189_v53  ;;  %v1069_v53 = vmul.f32 %v3039_v28, %v979_v37 }
 0x14c   : > { %v601_v56 = vadd.f32 %v537_v57, %v3024_v20  ;;  %v602_v1 = vadd.f32 %v538_v59, %v3027_v21  ;;  %v608_v57 = vadd.f32 %v544_v5, %v3027_v21 }
 0x14d   : > { %1575 = vmatprep.mubr.bf16.mxu0 %v1236_v14  ;;  %v1070_v14 = vmul.f32 %v3046_v33, %v979_v37 }
 0x14e   : > { %1576 = vmatmul.mubr.bf16.gmra.mrb[36].mxu0 %v1235_v26  ;;  %v707_v58 = vpop.permute.xlu1 %706  ;;  %v607_v26 = vadd.f32 %v543_v48, %v3024_v20 }
 0x14f   : > { %v801_v27 = vmul.f32 %v3021_v19, %v707_v58  ;;  %v802_v29 = vmul.f32 %v3033_v23, %v707_v58 }
 0x151   : > { %v865_v35 = vadd.f32 %v801_v27, %v601_v56  ;;  %v866_v4 = vadd.f32 %v802_v29, %v602_v1 }
 0x152   : > { %v711_v55 = vpop.permute.xlu1 %710 }
 0x153   : > { %v803_v38 = vmul.f32 %v3021_v19, %v711_v55  ;;  %v804_v51 = vmul.f32 %v3033_v23, %v711_v55  ;;  %v1129_v40 = vadd.f32 %v1065_v31, %v865_v35  ;;  %v1130_v36 = vadd.f32 %v1066_v32, %v866_v4 }
 0x155   : > { %v867_v0 = vadd.f32 %v803_v38, %v603_v24  ;;  %v868_v18 = vadd.f32 %v804_v51, %v604_v39  ;;  %v1194_v47 = vmax.f32 %v1130_v36, 0.0  ;;  %v1193_v49 = vmax.f32 %v1129_v40, 0.0 }
 0x157   : > { %v975_v42 = vpop.permute.xlu1 %974 }
 0x158   : > { %v1067_v41 = vmul.f32 %v3039_v28, %v975_v42  ;;  %v1068_v44 = vmul.f32 %v3046_v33, %v975_v42 }
 0x15a   : > { %v1131_v43 = vadd.f32 %v1067_v41, %v867_v0  ;;  %v1132_v50 = vadd.f32 %v1068_v44, %v868_v18  ;;  %v547_v18 = vmul.f32 %v3014_v15, %v457_v34  ;;  %v548_v41 = vmul.f32 %v3017_v16, %v457_v34  ;;  %v987_v44 = vpop.permute.xlu0 %986 }
 0x15c   : > { %v1195_v45 = vmax.f32 %v1131_v43, 0.0  ;;  %v1196_v8 = vmax.f32 %v1132_v50, 0.0  ;;  %v442_v46 = vpop.permute.xlu1 %441 }
 0x15d   : > { %v541_v61 = vmul.f32 %v3014_v15, %v442_v46  ;;  %v542_v63 = vmul.f32 %v3017_v16, %v442_v46 }
 0x15e   : > { %v1238_v6 = vpack.c.bf16 %v1196_v8, %v1194_v47  ;;  %v1237_v62 = vpack.c.bf16 %v1195_v45, %v1193_v49  ;;  %v1073_v47 = vmul.f32 %v3039_v28, %v987_v44  ;;  %v1074_v49 = vmul.f32 %v3046_v33, %v987_v44 }
 0x15f   : > { %v605_v60 = vadd.f32 %v541_v61, %v3024_v20  ;;  %v606_v11 = vadd.f32 %v542_v63, %v3027_v21 }
 0x160   : > { %1585 = vmatprep.mubr.bf16.mxu0 %v1238_v6  ;;  %v611_v6 = vadd.f32 %v547_v18, %v3024_v20 }
 0x161   : > { %1586 = vmatmul.mubr.bf16.gmra.mrb[40].mxu0 %v1237_v62  ;;  %v715_v2 = vpop.permute.xlu1 %714  ;;  %v612_v62 = vadd.f32 %v548_v41, %v3027_v21 }
 0x162   : > { %v805_v3 = vmul.f32 %v3021_v19, %v715_v2  ;;  %v806_v22 = vmul.f32 %v3033_v23, %v715_v2 }
 0x164   : > { %v869_v17 = vadd.f32 %v805_v3, %v605_v60  ;;  %v870_v12 = vadd.f32 %v806_v22, %v606_v11  ;;  %v1281_v22 = vld [vmem:[%s3586_s4] sm:$0x3] }
 0x165   : > { %v719_v52 = vpop.permute.xlu1 %718 }
 0x166   : > { %v807_v59 = vmul.f32 %v3021_v19, %v719_v52  ;;  %v808_v13 = vmul.f32 %v3033_v23, %v719_v52  ;;  %v1133_v58 = vadd.f32 %v1069_v53, %v869_v17  ;;  %v1134_v27 = vadd.f32 %v1070_v14, %v870_v12 }
 0x167   : > { %v3401_v17 = vrot.slane %v1281_v22, %v2993_v7  ;;  %v3404_v12 = vrot.slane %v1281_v22, %v2999_v9 }
 0x168   : > { %v871_v30 = vadd.f32 %v807_v59, %v607_v26  ;;  %v872_v25 = vadd.f32 %v808_v13, %v608_v57  ;;  %v1197_v31 = vmax.f32 %v1133_v58, 0.0  ;;  %v1198_v32 = vmax.f32 %v1134_v27, 0.0 }
 0x16a   : > { %v983_v29 = vpop.permute.xlu1 %982 }
 0x16b   : > { %v1071_v56 = vmul.f32 %v3039_v28, %v983_v29  ;;  %v1072_v1 = vmul.f32 %v3046_v33, %v983_v29 }
 0x16d   : > { %v1135_v54 = vadd.f32 %v1071_v56, %v871_v30  ;;  %v1136_v55 = vadd.f32 %v1072_v1, %v872_v25 }
 0x16f   : > { %v1199_v35 = vmax.f32 %v1135_v54, 0.0  ;;  %v1200_v4 = vmax.f32 %v1136_v55, 0.0  ;;  %v452_v24 = vpop.permute.xlu1 %451 }
 0x170   : > { %v545_v51 = vmul.f32 %v3014_v15, %v452_v24  ;;  %v546_v40 = vmul.f32 %v3017_v16, %v452_v24 }
 0x171   : > { %v1240_v39 = vpack.c.bf16 %v1200_v4, %v1198_v32  ;;  %v1239_v38 = vpack.c.bf16 %v1199_v35, %v1197_v31  ;;  %v995_v32 = vpop.permute.xlu0 %994 }
 0x172   : > { %v609_v43 = vadd.f32 %v545_v51, %v3024_v20  ;;  %v610_v50 = vadd.f32 %v546_v40, %v3027_v21  ;;  %v1077_v41 = vmul.f32 %v3039_v28, %v995_v32 }
 0x173   : > { %1595 = vmatprep.mubr.bf16.mxu0 %v1240_v39 }
 0x174   : > { %1596 = vmatmul.mubr.bf16.gmra.mrb[44].mxu0 %v1239_v38  ;;  %v723_v36 = vpop.permute.xlu1 %722 }
 0x175   : > { %v809_v42 = vmul.f32 %v3021_v19, %v723_v36  ;;  %v810_v0 = vmul.f32 %v3033_v23, %v723_v36 }
 0x177   : > { %v873_v8 = vadd.f32 %v809_v42, %v609_v43  ;;  %v874_v46 = vadd.f32 %v810_v0, %v610_v50  ;;  %v551_v42 = vmul.f32 %v3014_v15, %v3363_v10  ;;  %v552_v0 = vmul.f32 %v3017_v16, %v3363_v10 }
 0x178   : > { %v727_v45 = vpop.permute.xlu1 %726  ;;  %v1078_v50 = vmul.f32 %v3046_v33, %v995_v32 }
 0x179   : > { %v811_v61 = vmul.f32 %v3021_v19, %v727_v45  ;;  %v812_v34 = vmul.f32 %v3033_v23, %v727_v45  ;;  %v1137_v63 = vadd.f32 %v1073_v47, %v873_v8  ;;  %v1138_v2 = vadd.f32 %v1074_v49, %v874_v46 }
 0x17b   : > { %v875_v48 = vadd.f32 %v811_v61, %v611_v6  ;;  %v876_v5 = vadd.f32 %v812_v34, %v612_v62  ;;  %v1201_v53 = vmax.f32 %v1137_v63, 0.0  ;;  %v1202_v14 = vmax.f32 %v1138_v2, 0.0 }
 0x17c   : > { %v615_v34 = vadd.f32 %v551_v42, %v3024_v20  ;;  %v616_v63 = vadd.f32 %v552_v0, %v3027_v21 }
 0x17d   : > { %v991_v3 = vpop.permute.xlu1 %990 }
 0x17e   : > { %v1075_v37 = vmul.f32 %v3039_v28, %v991_v3  ;;  %v1076_v60 = vmul.f32 %v3046_v33, %v991_v3 }
 0x180   : > { %v1139_v11 = vadd.f32 %v1075_v37, %v875_v48  ;;  %v1140_v52 = vadd.f32 %v1076_v60, %v876_v5 }
 0x182   : > { %v1203_v26 = vmax.f32 %v1139_v11, 0.0  ;;  %v1204_v57 = vmax.f32 %v1140_v52, 0.0  ;;  %v462_v59 = vpop.permute.xlu1 %461 }
 0x183   : > { %v1487_v13 = vpop.f32.mrb[0].mxu0  ;;  %v549_v25 = vmul.f32 %v3014_v15, %v462_v59  ;;  %v550_v56 = vmul.f32 %v3017_v16, %v462_v59 }
 0x184   : > { %v1488_v58 = vadd.f32 %v1487_v13, %v3401_v17  ;;  %v1489_v27 = vpop.f32.mrb[1].mxu0  ;;  %v1242_v29 = vpack.c.bf16 %v1204_v57, %v1202_v14  ;;  %v1241_v30 = vpack.c.bf16 %v1203_v26, %v1201_v53 }
 0x185   : > { %v1490_v7 = vadd.f32 %v1489_v27, %v3404_v12  ;;  %v1491_v1 = vpop.f32.mrb[2].mxu0  ;;  %v613_v38 = vadd.f32 %v549_v25, %v3024_v20  ;;  %v614_v51 = vadd.f32 %v550_v56, %v3027_v21 }
 0x186   : > { %v1492_v9 = vadd.f32 %v1491_v1, %v3401_v17  ;;  %v1493_v54 = vpop.f32.mrb[3].mxu0  ;;  %1605 = vmatprep.mubr.bf16.mxu0 %v1242_v29  ;;  %v1646_v35 = vmax.f32 %v1488_v58, 0.0 }
 0x187   : > { %v1494_v55 = vadd.f32 %v1493_v54, %v3404_v12  ;;  %1606 = vmatmul.mubr.bf16.gmra.mrb[48].mxu0 %v1241_v30  ;;  %v731_v31 = vpop.permute.xlu1 %730  ;;  %v1647_v40 = vmax.f32 %v1490_v7, 0.0  ;;  %v1003_v30 = vpop.permute.xlu0 %1002 }
 0x188   : > { %v1648_v4 = vmax.f32 %v1492_v9, 0.0  ;;  %v813_v24 = vmul.f32 %v3021_v19, %v731_v31  ;;  %v814_v39 = vmul.f32 %v3033_v23, %v731_v31 }
 0x189   : > { %v1649_v36 = vmax.f32 %v1494_v55, 0.0 }
 0x18a   : > { %v1710_v18 = vpack.c.bf16 %v1648_v4, %v1646_v35  ;;  %v877_v44 = vadd.f32 %v813_v24, %v613_v38  ;;  %v878_v43 = vadd.f32 %v814_v39, %v614_v51 }
 0x18b   : > { %v1497_v45 = vpop.f32.mrb[4].mxu0  ;;  %v735_v8 = vpop.permute.xlu1 %734  ;;  %v1711_v46 = vpack.c.bf16 %v1649_v36, %v1647_v40 }
 0x18c   : > { %v1498_v47 = vadd.f32 %v1497_v45, %v3401_v17  ;;  %v1499_v49 = vpop.f32.mrb[5].mxu0  ;;  %v815_v6 = vmul.f32 %v3021_v19, %v735_v8  ;;  %v816_v61 = vmul.f32 %v3033_v23, %v735_v8  ;;  %v1141_v3 = vadd.f32 %v1077_v41, %v877_v44  ;;  %v477_v31 = vpop.permute.xlu0 %476 }
 0x18d   : > { %v1500_v62 = vadd.f32 %v1499_v49, %v3404_v12  ;;  %v1501_v10 = vpop.f32.mrb[6].mxu0  ;;  %1909 = vmatprep.mubr.bf16.mxu1 %v1711_v46  ;;  %v1142_v22 = vadd.f32 %v1078_v50, %v878_v43  ;;  %v555_v38 = vmul.f32 %v3014_v15, %v477_v31  ;;  %v556_v51 = vmul.f32 %v3017_v16, %v477_v31 }
 0x18e   : > { %v1503_v2 = vpop.f32.mrb[7].mxu0  ;;  %1910 = vmatmul.mubr.bf16.vlgmr.msra.gmra.mrb[0].mxu1 %v1710_v18  ;;  %v1502_v48 = vadd.f32 %v1501_v10, %v3401_v17  ;;  %v1650_v37 = vmax.f32 %v1498_v47, 0.0  ;;  %v879_v11 = vadd.f32 %v815_v6, %v615_v34  ;;  %v880_v52 = vadd.f32 %v816_v61, %v616_v63 }
 0x18f   : > { %v1504_v5 = vadd.f32 %v1503_v2, %v3404_v12  ;;  %v1651_v60 = vmax.f32 %v1500_v62, 0.0  ;;  %v1205_v25 = vmax.f32 %v1141_v3, 0.0  ;;  %v1206_v56 = vmax.f32 %v1142_v22, 0.0 }
 0x190   : > { %v999_v53 = vpop.permute.xlu1 %998  ;;  %v1652_v14 = vmax.f32 %v1502_v48, 0.0  ;;  %v619_v8 = vadd.f32 %v555_v38, %v3024_v20  ;;  %v620_v49 = vadd.f32 %v556_v51, %v3027_v21  ;;  %v1081_v10 = vmul.f32 %v3039_v28, %v1003_v30 }
 0x191   : > { %v1653_v26 = vmax.f32 %v1504_v5, 0.0  ;;  %v1079_v57 = vmul.f32 %v3039_v28, %v999_v53  ;;  %v1080_v59 = vmul.f32 %v3046_v33, %v999_v53  ;;  %v1082_v34 = vmul.f32 %v3046_v33, %v1003_v30 }
 0x192   : > { %v1712_v13 = vpack.c.bf16 %v1652_v14, %v1650_v37 }
 0x193   : > { %v1713_v58 = vpack.c.bf16 %v1653_v26, %v1651_v60  ;;  %v1143_v27 = vadd.f32 %v1079_v57, %v879_v11  ;;  %v1144_v29 = vadd.f32 %v1080_v59, %v880_v52 }
 0x195   : > { %v1207_v7 = vmax.f32 %v1143_v27, 0.0  ;;  %v1208_v1 = vmax.f32 %v1144_v29, 0.0  ;;  %1917 = vmatprep.mubr.bf16.mxu1 %v1713_v58  ;;  %v472_v9 = vpop.permute.xlu1 %471  ;;  %v487_v29 = vpop.permute.xlu0 %486 }
 0x196   : > { %1918 = vmatmul.mubr.bf16.gmra.mrb[4].mxu1 %v1712_v13  ;;  %v553_v32 = vmul.f32 %v3014_v15, %v472_v9  ;;  %v554_v35 = vmul.f32 %v3017_v16, %v472_v9 }
 0x197   : > { %v1244_v54 = vpack.c.bf16 %v1208_v1, %v1206_v56  ;;  %v1243_v55 = vpack.c.bf16 %v1207_v7, %v1205_v25 }
 0x198   : > { %v617_v36 = vadd.f32 %v553_v32, %v3024_v20  ;;  %v618_v42 = vadd.f32 %v554_v35, %v3027_v21 }
 0x199   : > { %1615 = vmatprep.mubr.bf16.mxu0 %v1244_v54  ;;  %v1011_v32 = vpop.permute.xlu0 %1010 }
 0x19a   : > { %1616 = vmatmul.mubr.bf16.gmra.mrb[52].mxu0 %v1243_v55  ;;  %v739_v4 = vpop.permute.xlu1 %738 }
 0x19b   : > { %v817_v24 = vmul.f32 %v3021_v19, %v739_v4  ;;  %v818_v39 = vmul.f32 %v3033_v23, %v739_v4 }
 0x19c   : > { %v1507_v40 = vpop.f32.mrb[8].mxu0 }
 0x19d   : > { %v1508_v0 = vadd.f32 %v1507_v40, %v3401_v17  ;;  %v1509_v18 = vpop.f32.mrb[9].mxu0  ;;  %v881_v50 = vadd.f32 %v817_v24, %v617_v36  ;;  %v882_v45 = vadd.f32 %v818_v39, %v618_v42  ;;  %v559_v39 = vmul.f32 %v3014_v15, %v487_v29 }
 0x19e   : > { %v1510_v41 = vadd.f32 %v1509_v18, %v3404_v12  ;;  %v1511_v44 = vpop.f32.mrb[10].mxu0  ;;  %v743_v43 = vpop.permute.xlu1 %742  ;;  %v560_v40 = vmul.f32 %v3017_v16, %v487_v29  ;;  %v1085_v36 = vmul.f32 %v3039_v28, %v1011_v32 }
 0x19f   : > { %v1512_v46 = vadd.f32 %v1511_v44, %v3401_v17  ;;  %v1513_v47 = vpop.f32.mrb[11].mxu0  ;;  %v819_v6 = vmul.f32 %v3021_v19, %v743_v43  ;;  %v820_v62 = vmul.f32 %v3033_v23, %v743_v43  ;;  %v1654_v63 = vmax.f32 %v1508_v0, 0.0 }
 0x1a0   : > { %v1514_v61 = vadd.f32 %v1513_v47, %v3404_v12  ;;  %v1655_v3 = vmax.f32 %v1510_v41, 0.0  ;;  %v1145_v48 = vadd.f32 %v1081_v10, %v881_v50  ;;  %v1146_v5 = vadd.f32 %v1082_v34, %v882_v45 }
 0x1a1   : > { %v1656_v2 = vmax.f32 %v1512_v46, 0.0  ;;  %v883_v60 = vadd.f32 %v819_v6, %v619_v8  ;;  %v884_v52 = vadd.f32 %v820_v62, %v620_v49  ;;  %v1086_v43 = vmul.f32 %v3046_v33, %v1011_v32 }
 0x1a2   : > { %v1657_v22 = vmax.f32 %v1514_v61, 0.0  ;;  %v1210_v30 = vmax.f32 %v1146_v5, 0.0  ;;  %v1209_v25 = vmax.f32 %v1145_v48, 0.0  ;;  %v624_v6 = vadd.f32 %v560_v40, %v3027_v21 }
 0x1a3   : > { %v1714_v37 = vpack.c.bf16 %v1656_v2, %v1654_v63  ;;  %v1007_v11 = vpop.permute.xlu1 %1006 }
 0x1a4   : > { %v1715_v53 = vpack.c.bf16 %v1657_v22, %v1655_v3  ;;  %v1083_v14 = vmul.f32 %v3039_v28, %v1007_v11  ;;  %v1084_v26 = vmul.f32 %v3046_v33, %v1007_v11 }
 0x1a6   : > { %v1147_v57 = vadd.f32 %v1083_v14, %v883_v60  ;;  %v1148_v59 = vadd.f32 %v1084_v26, %v884_v52  ;;  %1925 = vmatprep.mubr.bf16.mxu1 %v1715_v53 }
 0x1a7   : > { %1926 = vmatmul.mubr.bf16.gmra.mrb[8].mxu1 %v1714_v37 }
 0x1a8   : > { %v1211_v13 = vmax.f32 %v1147_v57, 0.0  ;;  %v1212_v58 = vmax.f32 %v1148_v59, 0.0  ;;  %v482_v27 = vpop.permute.xlu1 %481 }
 0x1a9   : > { %v557_v1 = vmul.f32 %v3014_v15, %v482_v27  ;;  %v558_v9 = vmul.f32 %v3017_v16, %v482_v27  ;;  %v623_v16 = vadd.f32 %v559_v39, %v3024_v20 }
 0x1aa   : > { %v1246_v56 = vpack.c.bf16 %v1212_v58, %v1210_v30  ;;  %v1245_v7 = vpack.c.bf16 %v1211_v13, %v1209_v25 }
 0x1ab   : > { %v621_v4 = vadd.f32 %v557_v1, %v3024_v20  ;;  %v622_v24 = vadd.f32 %v558_v9, %v3027_v21 }
 0x1ac   : > { %1625 = vmatprep.mubr.bf16.mxu0 %v1246_v56 }
 0x1ad   : > { %1626 = vmatmul.mubr.bf16.gmra.mrb[56].mxu0 %v1245_v7  ;;  %v747_v54 = vpop.permute.xlu1 %746 }
 0x1ae   : > { %v821_v55 = vmul.f32 %v3021_v19, %v747_v54  ;;  %v822_v31 = vmul.f32 %v3033_v23, %v747_v54 }
 0x1af   : > { %v1517_v35 = vpop.f32.mrb[12].mxu0 }
 0x1b0   : > { %v1518_v38 = vadd.f32 %v1517_v35, %v3401_v17  ;;  %v1519_v51 = vpop.f32.mrb[13].mxu0  ;;  %v885_v41 = vadd.f32 %v821_v55, %v621_v4  ;;  %v886_v44 = vadd.f32 %v822_v31, %v622_v24 }
 0x1b1   : > { %v1520_v42 = vadd.f32 %v1519_v51, %v3404_v12  ;;  %v1521_v0 = vpop.f32.mrb[14].mxu0  ;;  %v751_v18 = vpop.permute.xlu1 %750 }
 0x1b2   : > { %v1522_v50 = vadd.f32 %v1521_v0, %v3401_v17  ;;  %v1523_v45 = vpop.f32.mrb[15].mxu0  ;;  %v823_v15 = vmul.f32 %v3021_v19, %v751_v18  ;;  %v824_v8 = vmul.f32 %v3033_v23, %v751_v18  ;;  %v1658_v47 = vmax.f32 %v1518_v38, 0.0 }
 0x1b3   : > { %v1524_v46 = vadd.f32 %v1523_v45, %v3404_v12  ;;  %v1659_v62 = vmax.f32 %v1520_v42, 0.0  ;;  %v1149_v10 = vadd.f32 %v1085_v36, %v885_v41  ;;  %v1150_v34 = vadd.f32 %v1086_v43, %v886_v44 }
 0x1b4   : > { %v1660_v49 = vmax.f32 %v1522_v50, 0.0  ;;  %v887_v2 = vadd.f32 %v823_v15, %v623_v16  ;;  %v888_v22 = vadd.f32 %v824_v8, %v624_v6 }
 0x1b5   : > { %v1661_v61 = vmax.f32 %v1524_v46, 0.0  ;;  %v1213_v20 = vmax.f32 %v1149_v10, 0.0  ;;  %v1214_v60 = vmax.f32 %v1150_v34, 0.0 }
 0x1b6   : > { %v1716_v63 = vpack.c.bf16 %v1660_v49, %v1658_v47  ;;  %v1015_v3 = vpop.permute.xlu1 %1014 }
 0x1b7   : > { %v1717_v48 = vpack.c.bf16 %v1661_v61, %v1659_v62  ;;  %v1087_v19 = vmul.f32 %v3039_v28, %v1015_v3  ;;  %v1088_v23 = vmul.f32 %v3046_v33, %v1015_v3 }
 0x1b9   : > { %v1151_v5 = vadd.f32 %v1087_v19, %v887_v2  ;;  %v1152_v37 = vadd.f32 %v1088_v23, %v888_v22  ;;  %1933 = vmatprep.mubr.bf16.mxu1 %v1717_v48 }
 0x1ba   : > { %1934 = vmatmul.mubr.bf16.gmra.mrb[12].mxu1 %v1716_v63 }
 0x1bb   : > { %v1215_v21 = vmax.f32 %v1151_v5, 0.0  ;;  %v1216_v11 = vmax.f32 %v1152_v37, 0.0 }
 0x1bd   : > { %v1248_v52 = vpack.c.bf16 %v1216_v11, %v1214_v60  ;;  %v1247_v53 = vpack.c.bf16 %v1215_v21, %v1213_v20 }
 0x1bf   : > { %1635 = vmatprep.mubr.bf16.mxu0 %v1248_v52 }
 0x1c0   : > { %1636 = vmatmul.mubr.bf16.gmra.mrb[60].mxu0 %v1247_v53 }
 0x1c2   : > { %v1527_v14 = vpop.f32.mrb[16].mxu0 }
 0x1c3   : > { %v1528_v26 = vadd.f32 %v1527_v14, %v3401_v17  ;;  %v1529_v57 = vpop.f32.mrb[17].mxu0 }
 0x1c4   : > { %v1530_v28 = vadd.f32 %v1529_v57, %v3404_v12  ;;  %v1531_v59 = vpop.f32.mrb[18].mxu0 }
 0x1c5   : > { %v1532_v33 = vadd.f32 %v1531_v59, %v3401_v17  ;;  %v1533_v13 = vpop.f32.mrb[19].mxu0  ;;  %v1662_v27 = vmax.f32 %v1528_v26, 0.0 }
 0x1c6   : > { %v1534_v58 = vadd.f32 %v1533_v13, %v3404_v12  ;;  %v1663_v30 = vmax.f32 %v1530_v28, 0.0 }
 0x1c7   : > { %v1664_v29 = vmax.f32 %v1532_v33, 0.0 }
 0x1c8   : > { %v1665_v25 = vmax.f32 %v1534_v58, 0.0 }
 0x1c9   : > { %v1718_v56 = vpack.c.bf16 %v1664_v29, %v1662_v27 }
 0x1ca   : > { %v1719_v7 = vpack.c.bf16 %v1665_v25, %v1663_v30 }
 0x1cc   : > { %1941 = vmatprep.mubr.bf16.mxu1 %v1719_v7 }
 0x1cd   : > { %1942 = vmatmul.mubr.bf16.gmra.mrb[16].mxu1 %v1718_v56 }
 0x1d5   : > { %v1537_v1 = vpop.f32.mrb[20].mxu0 }
 0x1d6   : > { %v1538_v9 = vadd.f32 %v1537_v1, %v3401_v17  ;;  %v1539_v54 = vpop.f32.mrb[21].mxu0 }
 0x1d7   : > { %v1540_v55 = vadd.f32 %v1539_v54, %v3404_v12  ;;  %v1541_v31 = vpop.f32.mrb[22].mxu0 }
 0x1d8   : > { %v1542_v32 = vadd.f32 %v1541_v31, %v3401_v17  ;;  %v1543_v35 = vpop.f32.mrb[23].mxu0  ;;  %v1666_v24 = vmax.f32 %v1538_v9, 0.0 }
 0x1d9   : > { %v1544_v4 = vadd.f32 %v1543_v35, %v3404_v12  ;;  %v1667_v38 = vmax.f32 %v1540_v55, 0.0 }
 0x1da   : > { %v1668_v39 = vmax.f32 %v1542_v32, 0.0 }
 0x1db   : > { %v1669_v51 = vmax.f32 %v1544_v4, 0.0 }
 0x1dc   : > { %v1720_v40 = vpack.c.bf16 %v1668_v39, %v1666_v24 }
 0x1dd   : > { %v1721_v36 = vpack.c.bf16 %v1669_v51, %v1667_v38 }
 0x1df   : > { %1949 = vmatprep.mubr.bf16.mxu1 %v1721_v36 }
 0x1e0   : > { %1950 = vmatmul.mubr.bf16.gmra.mrb[20].mxu1 %v1720_v40 }
 0x1e8   : > { %v1547_v42 = vpop.f32.mrb[24].mxu0 }
 0x1e9   : > { %v1548_v0 = vadd.f32 %v1547_v42, %v3401_v17  ;;  %v1549_v18 = vpop.f32.mrb[25].mxu0 }
 0x1ea   : > { %v1550_v41 = vadd.f32 %v1549_v18, %v3404_v12  ;;  %v1551_v44 = vpop.f32.mrb[26].mxu0 }
 0x1eb   : > { %v1552_v43 = vadd.f32 %v1551_v44, %v3401_v17  ;;  %v1553_v50 = vpop.f32.mrb[27].mxu0  ;;  %v1670_v15 = vmax.f32 %v1548_v0, 0.0 }
 0x1ec   : > { %v1554_v45 = vadd.f32 %v1553_v50, %v3404_v12  ;;  %v1671_v46 = vmax.f32 %v1550_v41, 0.0 }
 0x1ed   : > { %v1672_v8 = vmax.f32 %v1552_v43, 0.0 }
 0x1ee   : > { %v1673_v16 = vmax.f32 %v1554_v45, 0.0 }
 0x1ef   : > { %v1722_v47 = vpack.c.bf16 %v1672_v8, %v1670_v15 }
 0x1f0   : > { %v1723_v49 = vpack.c.bf16 %v1673_v16, %v1671_v46 }
 0x1f2   : > { %1957 = vmatprep.mubr.bf16.mxu1 %v1723_v49 }
 0x1f3   : > { %1958 = vmatmul.mubr.bf16.gmra.mrb[24].mxu1 %v1722_v47 }
 0x1fb   : > { %v1557_v6 = vpop.f32.mrb[28].mxu0 }
 0x1fc   : > { %v1558_v62 = vadd.f32 %v1557_v6, %v3401_v17  ;;  %v1559_v61 = vpop.f32.mrb[29].mxu0 }
 0x1fd   : > { %v1560_v10 = vadd.f32 %v1559_v61, %v3404_v12  ;;  %v1561_v34 = vpop.f32.mrb[30].mxu0 }
 0x1fe   : > { %v1562_v63 = vadd.f32 %v1561_v34, %v3401_v17  ;;  %v1563_v2 = vpop.f32.mrb[31].mxu0  ;;  %v1674_v22 = vmax.f32 %v1558_v62, 0.0 }
 0x1ff   : > { %v1564_v3 = vadd.f32 %v1563_v2, %v3404_v12  ;;  %v1675_v19 = vmax.f32 %v1560_v10, 0.0 }
 0x200   : > { %v1676_v48 = vmax.f32 %v1562_v63, 0.0 }
 0x201   : > { %v1677_v23 = vmax.f32 %v1564_v3, 0.0 }
 0x202   : > { %v1724_v5 = vpack.c.bf16 %v1676_v48, %v1674_v22 }
 0x203   : > { %v1725_v37 = vpack.c.bf16 %v1677_v23, %v1675_v19 }
 0x205   : > { %1965 = vmatprep.mubr.bf16.mxu1 %v1725_v37 }
 0x206   : > { %1966 = vmatmul.mubr.bf16.gmra.mrb[28].mxu1 %v1724_v5 }
 0x20e   : > { %v1567_v20 = vpop.f32.mrb[32].mxu0 }
 0x20f   : > { %v1568_v60 = vadd.f32 %v1567_v20, %v3401_v17  ;;  %v1569_v21 = vpop.f32.mrb[33].mxu0 }
 0x210   : > { %v1570_v11 = vadd.f32 %v1569_v21, %v3404_v12  ;;  %v1571_v52 = vpop.f32.mrb[34].mxu0 }
 0x211   : > { %v1572_v53 = vadd.f32 %v1571_v52, %v3401_v17  ;;  %v1573_v14 = vpop.f32.mrb[35].mxu0  ;;  %v1678_v57 = vmax.f32 %v1568_v60, 0.0 }
 0x212   : > { %v1574_v26 = vadd.f32 %v1573_v14, %v3404_v12  ;;  %v1679_v59 = vmax.f32 %v1570_v11, 0.0 }
 0x213   : > { %v1680_v28 = vmax.f32 %v1572_v53, 0.0 }
 0x214   : > { %v1681_v33 = vmax.f32 %v1574_v26, 0.0 }
 0x215   : > { %v1726_v13 = vpack.c.bf16 %v1680_v28, %v1678_v57 }
 0x216   : > { %v1727_v58 = vpack.c.bf16 %v1681_v33, %v1679_v59 }
 0x218   : > { %1973 = vmatprep.mubr.bf16.mxu1 %v1727_v58 }
 0x219   : > { %1974 = vmatmul.mubr.bf16.gmra.mrb[32].mxu1 %v1726_v13  ;;  %v3511_v13 = vld [vmem:[%s3588_s6] ss:$0 sm:$0xff] }
 0x221   : > { %v1577_v27 = vpop.f32.mrb[36].mxu0 }
 0x222   : > { %v1578_v29 = vadd.f32 %v1577_v27, %v3401_v17  ;;  %v1579_v30 = vpop.f32.mrb[37].mxu0 }
 0x223   : > { %v1580_v25 = vadd.f32 %v1579_v30, %v3404_v12  ;;  %v1581_v56 = vpop.f32.mrb[38].mxu0 }
 0x224   : > { %v1582_v7 = vadd.f32 %v1581_v56, %v3401_v17  ;;  %v1583_v1 = vpop.f32.mrb[39].mxu0  ;;  %v1682_v54 = vmax.f32 %v1578_v29, 0.0 }
 0x225   : > { %v1584_v9 = vadd.f32 %v1583_v1, %v3404_v12  ;;  %v1683_v31 = vmax.f32 %v1580_v25, 0.0 }
 0x226   : > { %v1684_v55 = vmax.f32 %v1582_v7, 0.0 }
 0x227   : > { %v1685_v32 = vmax.f32 %v1584_v9, 0.0 }
 0x228   : > { %v1728_v35 = vpack.c.bf16 %v1684_v55, %v1682_v54 }
 0x229   : > { %v1729_v4 = vpack.c.bf16 %v1685_v32, %v1683_v31 }
 0x22b   : > { %1981 = vmatprep.mubr.bf16.mxu1 %v1729_v4 }
 0x22c   : > { %1982 = vmatmul.mubr.bf16.gmra.mrb[36].mxu1 %v1728_v35 }
 0x234   : > { %v1587_v24 = vpop.f32.mrb[40].mxu0 }
 0x235   : > { %v1588_v39 = vadd.f32 %v1587_v24, %v3401_v17  ;;  %v1589_v38 = vpop.f32.mrb[41].mxu0 }
 0x236   : > { %v1590_v51 = vadd.f32 %v1589_v38, %v3404_v12  ;;  %v1591_v40 = vpop.f32.mrb[42].mxu0 }
 0x237   : > { %v1592_v36 = vadd.f32 %v1591_v40, %v3401_v17  ;;  %v1593_v42 = vpop.f32.mrb[43].mxu0  ;;  %v1686_v18 = vmax.f32 %v1588_v39, 0.0 }
 0x238   : > { %v1594_v0 = vadd.f32 %v1593_v42, %v3404_v12  ;;  %v1687_v44 = vmax.f32 %v1590_v51, 0.0 }
 0x239   : > { %v1688_v41 = vmax.f32 %v1592_v36, 0.0 }
 0x23a   : > { %v1689_v43 = vmax.f32 %v1594_v0, 0.0 }
 0x23b   : > { %v1730_v50 = vpack.c.bf16 %v1688_v41, %v1686_v18 }
 0x23c   : > { %v1731_v45 = vpack.c.bf16 %v1689_v43, %v1687_v44 }
 0x23e   : > { %1989 = vmatprep.mubr.bf16.mxu1 %v1731_v45 }
 0x23f   : > { %1990 = vmatmul.mubr.bf16.gmra.mrb[40].mxu1 %v1730_v50 }
 0x247   : > { %v1597_v15 = vpop.f32.mrb[44].mxu0 }
 0x248   : > { %v1598_v8 = vadd.f32 %v1597_v15, %v3401_v17  ;;  %v1599_v46 = vpop.f32.mrb[45].mxu0 }
 0x249   : > { %v1600_v16 = vadd.f32 %v1599_v46, %v3404_v12  ;;  %v1601_v47 = vpop.f32.mrb[46].mxu0 }
 0x24a   : > { %v1602_v49 = vadd.f32 %v1601_v47, %v3401_v17  ;;  %v1603_v6 = vpop.f32.mrb[47].mxu0  ;;  %v1690_v61 = vmax.f32 %v1598_v8, 0.0 }
 0x24b   : > { %v1604_v62 = vadd.f32 %v1603_v6, %v3404_v12  ;;  %v1691_v34 = vmax.f32 %v1600_v16, 0.0 }
 0x24c   : > { %v1692_v10 = vmax.f32 %v1602_v49, 0.0 }
 0x24d   : > { %v1693_v63 = vmax.f32 %v1604_v62, 0.0 }
 0x24e   : > { %v1732_v2 = vpack.c.bf16 %v1692_v10, %v1690_v61 }
 0x24f   : > { %v1733_v3 = vpack.c.bf16 %v1693_v63, %v1691_v34 }
 0x251   : > { %1997 = vmatprep.mubr.bf16.mxu1 %v1733_v3 }
 0x252   : > { %1998 = vmatmul.mubr.bf16.gmra.mrb[44].mxu1 %v1732_v2 }
 0x25a   : > { %v1607_v22 = vpop.f32.mrb[48].mxu0 }
 0x25b   : > { %v1608_v48 = vadd.f32 %v1607_v22, %v3401_v17  ;;  %v1609_v19 = vpop.f32.mrb[49].mxu0 }
 0x25c   : > { %v1610_v23 = vadd.f32 %v1609_v19, %v3404_v12  ;;  %v1611_v5 = vpop.f32.mrb[50].mxu0 }
 0x25d   : > { %v1612_v37 = vadd.f32 %v1611_v5, %v3401_v17  ;;  %v1613_v20 = vpop.f32.mrb[51].mxu0  ;;  %v1694_v21 = vmax.f32 %v1608_v48, 0.0 }
 0x25e   : > { %v1614_v60 = vadd.f32 %v1613_v20, %v3404_v12  ;;  %v1695_v52 = vmax.f32 %v1610_v23, 0.0 }
 0x25f   : > { %v1696_v11 = vmax.f32 %v1612_v37, 0.0 }
 0x260   : > { %v1697_v53 = vmax.f32 %v1614_v60, 0.0 }
 0x261   : > { %v1734_v14 = vpack.c.bf16 %v1696_v11, %v1694_v21  ;;  %v2489_v26 = vpop.f32.mrb[0].mxu1 }
 0x262   : > { %v1735_v57 = vpack.c.bf16 %v1697_v53, %v1695_v52  ;;  %v2490_v28 = vpop.f32.mrb[1].mxu1 }
 0x263   : > { %v2491_v59 = vadd.f32 %v2490_v28, %v2489_v26  ;;  %v2492_v33 = vpop.f32.mrb[2].mxu1 }
 0x264   : > { %v2493_v58 = vpop.f32.mrb[3].mxu1  ;;  %2005 = vmatprep.mubr.bf16.mxu1 %v1735_v57 }
 0x265   : > { %v2494_v27 = vadd.f32 %v2493_v58, %v2492_v33  ;;  %2006 = vmatmul.mubr.bf16.gmra.mrb[48].mxu1 %v1734_v14  ;;  %v1912_v29 = vadd.f32 %v2491_v59, %v3511_v13 }
 0x267   : > { %v1915_v30 = vadd.f32 %v2494_v27, %v3511_v13 }
 0x269   : > { %v2381_v25 = vpack.c.bf16 %v1915_v30, %v1912_v29  ;;  %v2495_v56 = vpop.f32.mrb[4].mxu1 }
 0x26a   : > { %v2496_v7 = vpop.f32.mrb[5].mxu1 }
 0x26b   : > { %2382 = vst [vmem:[%s3519_s14] sm:$0xff] %v2381_v25   ;;  %v2497_v1 = vadd.f32 %v2496_v7, %v2495_v56  ;;  %v2498_v9 = vpop.f32.mrb[6].mxu1 }
 0x26c   : > { %v2499_v54 = vpop.f32.mrb[7].mxu1 }
 0x26d   : > { %v2500_v55 = vadd.f32 %v2499_v54, %v2498_v9  ;;  %v1617_v31 = vpop.f32.mrb[52].mxu0  ;;  %v1920_v4 = vadd.f32 %v2497_v1, %v3511_v13 }
 0x26e   : > { %v1618_v32 = vadd.f32 %v1617_v31, %v3401_v17  ;;  %v1619_v35 = vpop.f32.mrb[53].mxu0 }
 0x26f   : > { %v1923_v24 = vadd.f32 %v2500_v55, %v3511_v13  ;;  %v1620_v39 = vadd.f32 %v1619_v35, %v3404_v12  ;;  %v1621_v38 = vpop.f32.mrb[54].mxu0 }
 0x270   : > { %v1622_v51 = vadd.f32 %v1621_v38, %v3401_v17  ;;  %v1623_v40 = vpop.f32.mrb[55].mxu0  ;;  %v1698_v0 = vmax.f32 %v1618_v32, 0.0 }
 0x271   : > { %v2386_v36 = vpack.c.bf16 %v1923_v24, %v1920_v4  ;;  %v1624_v42 = vadd.f32 %v1623_v40, %v3404_v12  ;;  %v1699_v41 = vmax.f32 %v1620_v39, 0.0 }
 0x272   : > { %v1700_v18 = vmax.f32 %v1622_v51, 0.0 }
 0x273   : > { %2458 = vst [vmem:[%s3519_s14 + $0x8] sm:$0xff] %v2386_v36   ;;  %v1701_v44 = vmax.f32 %v1624_v42, 0.0 }
 0x274   : > { %v1736_v43 = vpack.c.bf16 %v1700_v18, %v1698_v0 }
 0x275   : > { %v1737_v50 = vpack.c.bf16 %v1701_v44, %v1699_v41 }
 0x277   : > { %2013 = vmatprep.mubr.bf16.mxu1 %v1737_v50 }
 0x278   : > { %2014 = vmatmul.mubr.bf16.gmra.mrb[52].mxu1 %v1736_v43 }
 0x27a   : > { %v2501_v45 = vpop.f32.mrb[8].mxu1 }
 0x27b   : > { %v2502_v15 = vpop.f32.mrb[9].mxu1 }
 0x27c   : > { %v2503_v8 = vadd.f32 %v2502_v15, %v2501_v45  ;;  %v2504_v46 = vpop.f32.mrb[10].mxu1 }
 0x27d   : > { %v2505_v16 = vpop.f32.mrb[11].mxu1 }
 0x27e   : > { %v2506_v47 = vadd.f32 %v2505_v16, %v2504_v46  ;;  %v1928_v49 = vadd.f32 %v2503_v8, %v3511_v13 }
 0x280   : > { %v1931_v6 = vadd.f32 %v2506_v47, %v3511_v13  ;;  %v1627_v62 = vpop.f32.mrb[56].mxu0 }
 0x281   : > { %v1628_v61 = vadd.f32 %v1627_v62, %v3401_v17  ;;  %v1629_v10 = vpop.f32.mrb[57].mxu0 }
 0x282   : > { %v2391_v34 = vpack.c.bf16 %v1931_v6, %v1928_v49  ;;  %v1630_v63 = vadd.f32 %v1629_v10, %v3404_v12  ;;  %v1631_v2 = vpop.f32.mrb[58].mxu0 }
 0x283   : > { %v1632_v3 = vadd.f32 %v1631_v2, %v3401_v17  ;;  %v1633_v22 = vpop.f32.mrb[59].mxu0  ;;  %v1702_v19 = vmax.f32 %v1628_v61, 0.0 }
 0x284   : > { %2459 = vst [vmem:[%s3519_s14 + $0x10] sm:$0xff] %v2391_v34   ;;  %v1634_v48 = vadd.f32 %v1633_v22, %v3404_v12  ;;  %v1703_v5 = vmax.f32 %v1630_v63, 0.0 }
 0x285   : > { %v1704_v23 = vmax.f32 %v1632_v3, 0.0 }
 0x286   : > { %v1705_v37 = vmax.f32 %v1634_v48, 0.0 }
 0x287   : > { %v1738_v20 = vpack.c.bf16 %v1704_v23, %v1702_v19 }
 0x288   : > { %v1739_v60 = vpack.c.bf16 %v1705_v37, %v1703_v5 }
 0x28a   : > { %2021 = vmatprep.mubr.bf16.mxu1 %v1739_v60 }
 0x28b   : > { %2022 = vmatmul.mubr.bf16.gmra.mrb[56].mxu1 %v1738_v20 }
 0x28d   : > { %v2507_v21 = vpop.f32.mrb[12].mxu1 }
 0x28e   : > { %v2508_v11 = vpop.f32.mrb[13].mxu1 }
 0x28f   : > { %v2509_v52 = vadd.f32 %v2508_v11, %v2507_v21  ;;  %v2510_v53 = vpop.f32.mrb[14].mxu1 }
 0x290   : > { %v2511_v14 = vpop.f32.mrb[15].mxu1 }
 0x291   : > { %v2512_v26 = vadd.f32 %v2511_v14, %v2510_v53  ;;  %v1936_v57 = vadd.f32 %v2509_v52, %v3511_v13 }
 0x293   : > { %v1939_v28 = vadd.f32 %v2512_v26, %v3511_v13  ;;  %v1637_v59 = vpop.f32.mrb[60].mxu0 }
 0x294   : > { %v1638_v33 = vadd.f32 %v1637_v59, %v3401_v17  ;;  %v1639_v58 = vpop.f32.mrb[61].mxu0 }
 0x295   : > { %v2396_v27 = vpack.c.bf16 %v1939_v28, %v1936_v57  ;;  %v1640_v29 = vadd.f32 %v1639_v58, %v3404_v12  ;;  %v1641_v30 = vpop.f32.mrb[62].mxu0 }
 0x296   : > { %v1642_v25 = vadd.f32 %v1641_v30, %v3401_v17  ;;  %v1643_v56 = vpop.f32.mrb[63].mxu0  ;;  %v1706_v1 = vmax.f32 %v1638_v33, 0.0 }
 0x297   : > { %2460 = vst [vmem:[%s3519_s14 + $0x18] sm:$0xff] %v2396_v27   ;;  %v1644_v7 = vadd.f32 %v1643_v56, %v3404_v12  ;;  %v1707_v54 = vmax.f32 %v1640_v29, 0.0 }
 0x298   : > { %v1708_v9 = vmax.f32 %v1642_v25, 0.0 }
 0x299   : > { %v1709_v55 = vmax.f32 %v1644_v7, 0.0 }
 0x29a   : > { %v1740_v31 = vpack.c.bf16 %v1708_v9, %v1706_v1 }
 0x29b   : > { %v1741_v32 = vpack.c.bf16 %v1709_v55, %v1707_v54 }
 0x29d   : > { %2029 = vmatprep.mubr.bf16.mxu1 %v1741_v32 }
 0x29e   : > { %2030 = vmatmul.mubr.bf16.gmra.mrb[60].mxu1 %v1740_v31 }
 0x2a0   : > { %v2513_v35 = vpop.f32.mrb[16].mxu1 }
 0x2a1   : > { %v2514_v4 = vpop.f32.mrb[17].mxu1 }
 0x2a2   : > { %v2515_v24 = vadd.f32 %v2514_v4, %v2513_v35  ;;  %v2516_v39 = vpop.f32.mrb[18].mxu1 }
 0x2a3   : > { %v2517_v38 = vpop.f32.mrb[19].mxu1 }
 0x2a4   : > { %v2518_v17 = vadd.f32 %v2517_v38, %v2516_v39  ;;  %v1944_v51 = vadd.f32 %v2515_v24, %v3511_v13 }
 0x2a6   : > { %v1947_v12 = vadd.f32 %v2518_v17, %v3511_v13 }
 0x2a8   : > { %v2401_v40 = vpack.c.bf16 %v1947_v12, %v1944_v51 }
 0x2aa   : > { %2461 = vst [vmem:[%s3519_s14 + $0x20] sm:$0xff] %v2401_v40  }
 0x2b3   : > { %v2519_v36 = vpop.f32.mrb[20].mxu1 }
 0x2b4   : > { %v2520_v42 = vpop.f32.mrb[21].mxu1 }
 0x2b5   : > { %v2521_v0 = vadd.f32 %v2520_v42, %v2519_v36  ;;  %v2522_v18 = vpop.f32.mrb[22].mxu1 }
 0x2b6   : > { %v2523_v41 = vpop.f32.mrb[23].mxu1 }
 0x2b7   : > { %v2524_v44 = vadd.f32 %v2523_v41, %v2522_v18  ;;  %v1952_v43 = vadd.f32 %v2521_v0, %v3511_v13 }
 0x2b9   : > { %v1955_v50 = vadd.f32 %v2524_v44, %v3511_v13 }
 0x2bb   : > { %v2406_v45 = vpack.c.bf16 %v1955_v50, %v1952_v43 }
 0x2bd   : > { %2462 = vst [vmem:[%s3519_s14 + $0x28] sm:$0xff] %v2406_v45  }
 0x2c6   : > { %v2525_v15 = vpop.f32.mrb[24].mxu1 }
 0x2c7   : > { %v2526_v8 = vpop.f32.mrb[25].mxu1 }
 0x2c8   : > { %v2527_v46 = vadd.f32 %v2526_v8, %v2525_v15  ;;  %v2528_v16 = vpop.f32.mrb[26].mxu1 }
 0x2c9   : > { %v2529_v47 = vpop.f32.mrb[27].mxu1 }
 0x2ca   : > { %v2530_v49 = vadd.f32 %v2529_v47, %v2528_v16  ;;  %v1960_v6 = vadd.f32 %v2527_v46, %v3511_v13 }
 0x2cc   : > { %v1963_v62 = vadd.f32 %v2530_v49, %v3511_v13 }
 0x2ce   : > { %v2411_v61 = vpack.c.bf16 %v1963_v62, %v1960_v6 }
 0x2d0   : > { %2463 = vst [vmem:[%s3519_s14 + $0x30] sm:$0xff] %v2411_v61  }
 0x2d9   : > { %v2531_v10 = vpop.f32.mrb[28].mxu1 }
 0x2da   : > { %v2532_v34 = vpop.f32.mrb[29].mxu1 }
 0x2db   : > { %v2533_v63 = vadd.f32 %v2532_v34, %v2531_v10  ;;  %v2534_v2 = vpop.f32.mrb[30].mxu1 }
 0x2dc   : > { %v2535_v3 = vpop.f32.mrb[31].mxu1 }
 0x2dd   : > { %v2536_v22 = vadd.f32 %v2535_v3, %v2534_v2  ;;  %v1968_v48 = vadd.f32 %v2533_v63, %v3511_v13 }
 0x2df   : > { %v1971_v19 = vadd.f32 %v2536_v22, %v3511_v13 }
 0x2e1   : > { %v2416_v23 = vpack.c.bf16 %v1971_v19, %v1968_v48 }
 0x2e3   : > { %2464 = vst [vmem:[%s3519_s14 + $0x38] sm:$0xff] %v2416_v23  }
 0x2ec   : > { %v2537_v5 = vpop.f32.mrb[32].mxu1 }
 0x2ed   : > { %v2538_v37 = vpop.f32.mrb[33].mxu1 }
 0x2ee   : > { %v2539_v20 = vadd.f32 %v2538_v37, %v2537_v5  ;;  %v2540_v60 = vpop.f32.mrb[34].mxu1 }
 0x2ef   : > { %v2541_v21 = vpop.f32.mrb[35].mxu1 }
 0x2f0   : > { %v2542_v11 = vadd.f32 %v2541_v21, %v2540_v60  ;;  %v1976_v52 = vadd.f32 %v2539_v20, %v3511_v13 }
 0x2f2   : > { %v1979_v53 = vadd.f32 %v2542_v11, %v3511_v13 }
 0x2f4   : > { %v2421_v14 = vpack.c.bf16 %v1979_v53, %v1976_v52 }
 0x2f6   : > { %2465 = vst [vmem:[%s3519_s14 + $0x40] sm:$0xff] %v2421_v14  }
 0x2ff   : > { %v2543_v26 = vpop.f32.mrb[36].mxu1 }
 0x300   : > { %v2544_v57 = vpop.f32.mrb[37].mxu1 }
 0x301   : > { %v2545_v28 = vadd.f32 %v2544_v57, %v2543_v26  ;;  %v2546_v59 = vpop.f32.mrb[38].mxu1 }
 0x302   : > { %v2547_v33 = vpop.f32.mrb[39].mxu1 }
 0x303   : > { %v2548_v58 = vadd.f32 %v2547_v33, %v2546_v59  ;;  %v1984_v27 = vadd.f32 %v2545_v28, %v3511_v13 }
 0x305   : > { %v1987_v29 = vadd.f32 %v2548_v58, %v3511_v13 }
 0x307   : > { %v2426_v30 = vpack.c.bf16 %v1987_v29, %v1984_v27 }
 0x309   : > { %2466 = vst [vmem:[%s3519_s14 + $0x48] sm:$0xff] %v2426_v30  }
 0x312   : > { %v2549_v25 = vpop.f32.mrb[40].mxu1 }
 0x313   : > { %v2550_v56 = vpop.f32.mrb[41].mxu1 }
 0x314   : > { %v2551_v7 = vadd.f32 %v2550_v56, %v2549_v25  ;;  %v2552_v1 = vpop.f32.mrb[42].mxu1 }
 0x315   : > { %v2553_v9 = vpop.f32.mrb[43].mxu1 }
 0x316   : > { %v2554_v54 = vadd.f32 %v2553_v9, %v2552_v1  ;;  %v1992_v55 = vadd.f32 %v2551_v7, %v3511_v13 }
 0x318   : > { %v1995_v31 = vadd.f32 %v2554_v54, %v3511_v13 }
 0x31a   : > { %v2431_v32 = vpack.c.bf16 %v1995_v31, %v1992_v55 }
 0x31c   : > { %2467 = vst [vmem:[%s3519_s14 + $0x50] sm:$0xff] %v2431_v32  }
 0x325   : > { %v2555_v35 = vpop.f32.mrb[44].mxu1 }
 0x326   : > { %v2556_v4 = vpop.f32.mrb[45].mxu1 }
 0x327   : > { %v2557_v24 = vadd.f32 %v2556_v4, %v2555_v35  ;;  %v2558_v39 = vpop.f32.mrb[46].mxu1 }
 0x328   : > { %v2559_v38 = vpop.f32.mrb[47].mxu1 }
 0x329   : > { %v2560_v17 = vadd.f32 %v2559_v38, %v2558_v39  ;;  %v2000_v51 = vadd.f32 %v2557_v24, %v3511_v13 }
 0x32b   : > { %v2003_v12 = vadd.f32 %v2560_v17, %v3511_v13 }
 0x32d   : > { %v2436_v40 = vpack.c.bf16 %v2003_v12, %v2000_v51 }
 0x32f   : > { %2468 = vst [vmem:[%s3519_s14 + $0x58] sm:$0xff] %v2436_v40  }
 0x338   : > { %v2561_v36 = vpop.f32.mrb[48].mxu1 }
 0x339   : > { %v2562_v42 = vpop.f32.mrb[49].mxu1 }
 0x33a   : > { %v2563_v0 = vadd.f32 %v2562_v42, %v2561_v36  ;;  %v2564_v18 = vpop.f32.mrb[50].mxu1 }
 0x33b   : > { %v2565_v41 = vpop.f32.mrb[51].mxu1 }
 0x33c   : > { %v2566_v44 = vadd.f32 %v2565_v41, %v2564_v18  ;;  %v2008_v43 = vadd.f32 %v2563_v0, %v3511_v13 }
 0x33e   : > { %v2011_v50 = vadd.f32 %v2566_v44, %v3511_v13 }
 0x340   : > { %v2441_v45 = vpack.c.bf16 %v2011_v50, %v2008_v43 }
 0x342   : > { %2469 = vst [vmem:[%s3519_s14 + $0x60] sm:$0xff] %v2441_v45  }
 0x34b   : > { %v2567_v15 = vpop.f32.mrb[52].mxu1 }
 0x34c   : > { %v2568_v8 = vpop.f32.mrb[53].mxu1 }
 0x34d   : > { %v2569_v46 = vadd.f32 %v2568_v8, %v2567_v15  ;;  %v2570_v16 = vpop.f32.mrb[54].mxu1 }
 0x34e   : > { %v2571_v47 = vpop.f32.mrb[55].mxu1 }
 0x34f   : > { %v2572_v49 = vadd.f32 %v2571_v47, %v2570_v16  ;;  %v2016_v6 = vadd.f32 %v2569_v46, %v3511_v13 }
 0x351   : > { %v2019_v62 = vadd.f32 %v2572_v49, %v3511_v13 }
 0x353   : > { %v2446_v61 = vpack.c.bf16 %v2019_v62, %v2016_v6 }
 0x355   : > { %2470 = vst [vmem:[%s3519_s14 + $0x68] sm:$0xff] %v2446_v61  }
 0x35e   : > { %v2573_v10 = vpop.f32.mrb[56].mxu1 }
 0x35f   : > { %v2574_v34 = vpop.f32.mrb[57].mxu1 }
 0x360   : > { %v2575_v63 = vadd.f32 %v2574_v34, %v2573_v10  ;;  %v2576_v2 = vpop.f32.mrb[58].mxu1 }
 0x361   : > { %v2577_v3 = vpop.f32.mrb[59].mxu1 }
 0x362   : > { %v2578_v22 = vadd.f32 %v2577_v3, %v2576_v2  ;;  %v2024_v48 = vadd.f32 %v2575_v63, %v3511_v13 }
 0x364   : > { %v2027_v19 = vadd.f32 %v2578_v22, %v3511_v13 }
 0x366   : > { %v2451_v23 = vpack.c.bf16 %v2027_v19, %v2024_v48 }
 0x368   : > { %2471 = vst [vmem:[%s3519_s14 + $0x70] sm:$0xff] %v2451_v23  }
 0x371   : > { %v2579_v5 = vpop.f32.mrb[60].mxu1 }
 0x372   : > { %v2580_v37 = vpop.f32.mrb[61].mxu1 }
 0x373   : > { %v2581_v20 = vadd.f32 %v2580_v37, %v2579_v5  ;;  %v2582_v60 = vpop.f32.mrb[62].mxu1 }
 0x374   : > { %v2583_v21 = vpop.f32.mrb[63].mxu1 }
 0x375   : > { %v2584_v11 = vadd.f32 %v2583_v21, %v2582_v60  ;;  %v2032_v52 = vadd.f32 %v2581_v20, %v3511_v13 }
 0x377   : > { %v2035_v53 = vadd.f32 %v2584_v11, %v3511_v13 }
 0x379   : > { %v2456_v14 = vpack.c.bf16 %v2035_v53, %v2032_v52 }
 0x37b   : > { %2472 = vst [vmem:[%s3519_s14 + $0x78] sm:$0xff] %v2456_v14  }
 0x37c PF: > { %s17_s24 = sadd.s32 1, %s2720_s24  }
 0x37d   : > { %p14_p4 = scmp.ge.s32.totalorder %s17_s24, 4  }
 0x37f   :  { %16 = sbr.rel (!%p14_p4) target bundleno = 1 (0x1), region = 78 }

</bundles_post_ra>
